<compile_context>
chip_gen: v7x
topology: tpu7x:2x2x1
jax: 0.10.0
libtpu: 0.0.40
codegen_flags: <defaults>
</compile_context>

<pallas_src>
import functools

import jax
import jax.numpy as jnp
from jax.experimental import pallas as pl
from jax.experimental.pallas import tpu as pltpu

_HIGHEST = jax.lax.Precision.HIGHEST


# ---------------------------------------------------------------------------
# Kernels
# ---------------------------------------------------------------------------

def _se_kernel(x_ref, w1_ref, w2_ref, o_ref, *, inv_t):
    """Single-pass SE for one (Bblk, C, T) slab (T on the lane axis)."""
    # Squeeze: mean over time.  Lane-axis reduce with f32 accumulation.
    # Read the ref here and again below; don't keep the slab live in vregs.
    y = jnp.sum(x_ref[...], axis=-1, dtype=jnp.float32) * inv_t            # (Bblk, C)

    # Excite: FC -> ReLU -> FC -> sigmoid, once per batch element (M = Bblk).
    h = jnp.maximum(
        jnp.dot(y, w1_ref[...], preferred_element_type=jnp.float32,
                precision=_HIGHEST), 0.0)                                   # (Bblk, H)
    z = jnp.dot(h, w2_ref[...], preferred_element_type=jnp.float32,
                precision=_HIGHEST)                                         # (Bblk, C)
    s = jax.nn.sigmoid(z)                                                   # (Bblk, C)

    # Scale: per-(b, c) gate broadcast along the lane (time) axis.
    gate = s.astype(o_ref.dtype)[:, :, None]                                # (Bblk, C, 1)
    o_ref[...] = x_ref[...] * gate


def _se_gate_kernel(x_ref, w1_ref, w2_ref, s_ref, acc_ref, *, inv_t):
    """Two-pass fallback, pass 1: accumulate the time pool over T tiles and
    finalize the (1, C, 1) gate on the last tile."""
    tj = pl.program_id(1)

    @pl.when(tj == 0)
    def _():
        acc_ref[...] = jnp.zeros_like(acc_ref)

    acc_ref[...] += jnp.sum(x_ref[...], axis=-1, dtype=jnp.float32)         # (1, C)

    @pl.when(tj == pl.num_programs(1) - 1)
    def _():
        y = acc_ref[...] * inv_t                                            # (1, C)
        h = jnp.maximum(
            jnp.dot(y, w1_ref[...], preferred_element_type=jnp.float32,
                    precision=_HIGHEST), 0.0)
        z = jnp.dot(h, w2_ref[...], preferred_element_type=jnp.float32,
                    precision=_HIGHEST)
        s_ref[...] = jax.nn.sigmoid(z)[:, :, None].astype(s_ref.dtype)      # (1, C, 1)


def _se_scale_kernel(x_ref, s_ref, o_ref):
    """Two-pass fallback, pass 2: apply the precomputed gate to one T tile."""
    o_ref[...] = x_ref[...] * s_ref[...].astype(o_ref.dtype)


# ---------------------------------------------------------------------------
# Trace-time tiling helpers
# ---------------------------------------------------------------------------

def _vmem_budget_bytes():
    """Per-generation VMEM budget for pipeline buffers + resident weights."""
    cap = None
    try:
        info = pltpu.get_tpu_info()
        for name in ("vmem_capacity_bytes", "vmem_size_bytes", "vmem_bytes"):
            cap = getattr(info, name, None)
            if cap:
                break
    except Exception:  # info unavailable: be conservative
        cap = None
    if not cap:
        cap = 64 << 20            # v7x per-TC VMEM; safe lower bound everywhere
    # ~16 MiB headroom for compiler-internal scratch; never ask for more than
    # ~100 MiB even on the 128 MiB (v5e/v6e) parts.
    return int(max(min(cap - (16 << 20), 100 << 20), 24 << 20))


def _choose_bblk(batch, per_b_bytes, w_bytes, budget):
    """Largest batch block whose double-buffered footprint fits the budget,
    preferring >= 2 grid steps so the megacore can shard the batch axis."""
    fits = [b for b in range(1, batch + 1)
            if batch % b == 0
            and 4 * b * per_b_bytes + 2 * w_bytes + (1 << 20) <= budget]
    if not fits:
        return None
    multi_step = [b for b in fits if batch // b >= 2]
    return max(multi_step) if multi_step else max(fits)


def _choose_t_tile(t_total, c, itemsize, w_bytes, budget):
    """Largest lane-aligned (multiple-of-128) T tile for the two-pass fallback,
    preferring >= 2 tiles so the reduction pipeline is actually exercised."""
    avail = budget - 2 * w_bytes - (1 << 20)
    fits = [t for t in range(128, t_total + 1, 128)
            if t_total % t == 0 and 4 * c * t * itemsize <= avail]
    if not fits:
        return 128
    multi = [t for t in fits if t_total // t >= 2]
    return max(multi) if multi else max(fits)


# ---------------------------------------------------------------------------
# pallas_call wrappers
# ---------------------------------------------------------------------------

def _se_single_pass(x, w1, w2, bblk, w_bytes):
    B, C, T = x.shape
    H = w1.shape[1]
    itemsize = jnp.dtype(x.dtype).itemsize
    block_bytes = bblk * C * T * itemsize
    footprint = 4 * block_bytes + 2 * w_bytes       # 2x double-buffered I/O + weights
    vmem_limit = int(max(32 << 20, footprint + (2 << 20)))

    x_bytes = B * C * T * itemsize
    cost = pl.CostEstimate(
        flops=2 * B * C * T + 4 * B * C * H,        # pool + scale + the two FCs
        transcendentals=B * C,                      # sigmoid
        bytes_accessed=2 * x_bytes + w_bytes,
    )

    return pl.pallas_call(
        functools.partial(_se_kernel, inv_t=1.0 / T),
        out_shape=jax.ShapeDtypeStruct((B, C, T), x.dtype),
        grid=(B // bblk,),
        in_specs=[
            pl.BlockSpec((bblk, C, T), lambda b: (b, 0, 0)),   # per-step batch slab
            pl.BlockSpec((C, H), lambda b: (0, 0)),            # VMEM-resident weight
            pl.BlockSpec((H, C), lambda b: (0, 0)),            # VMEM-resident weight
        ],
        out_specs=pl.BlockSpec((bblk, C, T), lambda b: (b, 0, 0)),
        compiler_params=pltpu.CompilerParams(
            dimension_semantics=("parallel",),                 # shard batch across TCs
            vmem_limit_bytes=vmem_limit,
        ),
        cost_estimate=cost,
    )(x, w1, w2)


def _se_two_pass(x, w1, w2, w_bytes, budget):
    B, C, T = x.shape
    H = w1.shape[1]
    itemsize = jnp.dtype(x.dtype).itemsize
    tT = _choose_t_tile(T, C, itemsize, w_bytes, budget)
    nT = T // tT
    block_bytes = C * tT * itemsize
    vmem_limit = int(max(32 << 20, 4 * block_bytes + 2 * w_bytes + (2 << 20)))
    x_bytes = B * C * T * itemsize
    gate_bytes = B * C * 4

    # Pass 1: (B, C, 1) f32 gate.  T is a reduction axis ("arbitrary"); the
    # output block is revisited across it and only written at the final tile.
    gate = pl.pallas_call(
        functools.partial(_se_gate_kernel, inv_t=1.0 / T),
        out_shape=jax.ShapeDtypeStruct((B, C, 1), jnp.float32),
        grid=(B, nT),
        in_specs=[
            pl.BlockSpec((1, C, tT), lambda b, t: (b, 0, t)),
            pl.BlockSpec((C, H), lambda b, t: (0, 0)),
            pl.BlockSpec((H, C), lambda b, t: (0, 0)),
        ],
        out_specs=pl.BlockSpec((1, C, 1), lambda b, t: (b, 0, 0)),
        scratch_shapes=[pltpu.VMEM((1, C), jnp.float32)],
        compiler_params=pltpu.CompilerParams(
            dimension_semantics=("parallel", "arbitrary"),
            vmem_limit_bytes=vmem_limit,
        ),
        cost_estimate=pl.CostEstimate(
            flops=B * C * T + 4 * B * C * H,
            transcendentals=B * C,
            bytes_accessed=x_bytes + w_bytes + gate_bytes,
        ),
    )(x, w1, w2)

    # Pass 2: apply the gate tile by tile (fully parallel).
    return pl.pallas_call(
        _se_scale_kernel,
        out_shape=jax.ShapeDtypeStruct((B, C, T), x.dtype),
        grid=(B, nT),
        in_specs=[
            pl.BlockSpec((1, C, tT), lambda b, t: (b, 0, t)),
            pl.BlockSpec((1, C, 1), lambda b, t: (b, 0, 0)),
        ],
        out_specs=pl.BlockSpec((1, C, tT), lambda b, t: (b, 0, t)),
        compiler_params=pltpu.CompilerParams(
            dimension_semantics=("parallel", "parallel"),
            vmem_limit_bytes=vmem_limit,
        ),
        cost_estimate=pl.CostEstimate(
            flops=B * C * T,
            transcendentals=0,
            bytes_accessed=2 * x_bytes + gate_bytes,
        ),
    )(x, gate)


@functools.partial(jax.jit, static_argnames=("force_two_pass",))
def squeeze_excite(x, w1, w2, *, force_two_pass=False):
    """SE forward. x: (B, C, T); w1: (C, H); w2: (H, C). Returns (B, C, T)."""
    B, C, T = x.shape
    H = w1.shape[1]
    assert w1.shape == (C, H) and w2.shape == (H, C)

    itemsize = jnp.dtype(x.dtype).itemsize
    w_bytes = (w1.size * jnp.dtype(w1.dtype).itemsize
               + w2.size * jnp.dtype(w2.dtype).itemsize)
    budget = _vmem_budget_bytes()

    bblk = None if force_two_pass else _choose_bblk(B, C * T * itemsize, w_bytes, budget)
    if bblk is None:
        if T % 128 == 0:
            return _se_two_pass(x, w1, w2, w_bytes, budget)
        # TODO(synk): huge per-batch slab with a non-128-aligned T; falls back to
        # an oversized single-pass block instead of a padded two-pass tiling.
        bblk = 1
    return _se_single_pass(x, w1, w2, bblk, w_bytes)


# ---------------------------------------------------------------------------
# Parameters / reference / self-test
# ---------------------------------------------------------------------------

def init_params(channel, reduction, key):
    """Deterministic synthetic weights matching nn.Linear shapes (no bias).

    PyTorch Linear(in, out) weight is (out, in) and computes y = x @ W.T;
    we store the transposed matrices so the kernel does plain x @ W.
    """
    hidden = channel // reduction
    k1, k2 = jax.random.split(key)
    w1 = (jax.random.uniform(k1, (hidden, channel), jnp.float32,
                             minval=-1.0, maxval=1.0) / jnp.sqrt(channel)).T   # (C, H)
    w2 = (jax.random.uniform(k2, (channel, hidden), jnp.float32,
                             minval=-1.0, maxval=1.0) / jnp.sqrt(hidden)).T    # (H, C)
    return jnp.asarray(w1), jnp.asarray(w2)


def reference(x, w1, w2):
    y = jnp.mean(x.astype(jnp.float32), axis=-1)                               # (B, C)
    h = jnp.maximum(jnp.dot(y, w1, precision=_HIGHEST), 0.0)                   # (B, H)
    s = jax.nn.sigmoid(jnp.dot(h, w2, precision=_HIGHEST))                     # (B, C)
    return x * s[:, :, None].astype(x.dtype)


if __name__ == "__main__":
    B, C, T = 4, 128, 256        # small, lane-aligned (T multiple of 128)
    reduction = 16               # hidden H = 8

    key = jax.random.PRNGKey(0)
    kx, kw = jax.random.split(key)
    x = jax.random.normal(kx, (B, C, T), dtype=jnp.float32)
    w1, w2 = init_params(C, reduction, kw)

    ref = reference(x, w1, w2)

    # Single-pass path (auto-selected at these shapes: Bblk=2, grid=2).
    out = jax.block_until_ready(squeeze_excite(x, w1, w2))
    assert out.shape == (B, C, T)
    assert jnp.allclose(out, ref, atol=5e-5, rtol=1e-5), \
        float(jnp.max(jnp.abs(out - ref)))

    # Also exercise the large-T two-pass fallback (forced) at the same shapes.
    out2 = jax.block_until_ready(squeeze_excite(x, w1, w2, force_two_pass=True))
    assert jnp.allclose(out2, ref, atol=5e-5, rtol=1e-5), \
        float(jnp.max(jnp.abs(out2 - ref)))

    print("KERNEL_OK")
</pallas_src>

<mosaic_0001>
module attributes {stable_mosaic.version = 11 : i64} {
  func.func @_se_kernel(%arg0: i32, %arg1: memref<2x128x256xf32, #tpu.memory_space<vmem>>, %arg2: memref<128x8xf32, #tpu.memory_space<vmem>>, %arg3: memref<8x128xf32, #tpu.memory_space<vmem>>, %arg4: memref<2x128x256xf32, #tpu.memory_space<vmem>>) attributes {dimension_semantics = [#tpu.dimension_semantics<parallel>], iteration_bounds = array<i64: 2>, scalar_prefetch = 0 : i64, scratch_operands = 0 : i64, tpu.core_type = #tpu.core_type<tc>, window_params = [{transform_indices = @transform_0, window_bounds = array<i64: 2, 128, 256>}, {pipeline_mode = #tpu.pipeline_mode<synchronous>, transform_indices = @transform_1, window_bounds = array<i64: 128, 8>}, {pipeline_mode = #tpu.pipeline_mode<synchronous>, transform_indices = @transform_2, window_bounds = array<i64: 8, 128>}, {transform_indices = @transform_3, window_bounds = array<i64: 2, 128, 256>}]} {
    %c0 = arith.constant 0 : index
    %c0_0 = arith.constant 0 : index
    %c0_1 = arith.constant 0 : index
    %0 = vector.load %arg1[%c0, %c0_0, %c0_1] : memref<2x128x256xf32, #tpu.memory_space<vmem>>, vector<2x128x256xf32>
    %cst = arith.constant dense<0.000000e+00> : vector<2x128xf32>
    %1 = vector.multi_reduction <add>, %0, %cst [2] : vector<2x128x256xf32> to vector<2x128xf32>
    %cst_2 = arith.constant 3.906250e-03 : f32
    %2 = vector.broadcast %cst_2 : f32 to vector<2x128xf32>
    %3 = arith.mulf %1, %2 : vector<2x128xf32>
    %c0_3 = arith.constant 0 : index
    %c0_4 = arith.constant 0 : index
    %4 = vector.load %arg2[%c0_3, %c0_4] : memref<128x8xf32, #tpu.memory_space<vmem>>, vector<128x8xf32>
    %cst_5 = arith.constant dense<0.000000e+00> : vector<2x8xf32>
    %5 = tpu.matmul %3, %4, %cst_5 {dimension_numbers = #tpu.dot_dimension_numbers<[1], [0], [0], [1], [0, 0, 1, 1], [], []>, precision = #tpu.contract_precision<fp32>} : vector<2x128xf32>, vector<128x8xf32>, vector<2x8xf32> -> vector<2x8xf32>
    %cst_6 = arith.constant 0.000000e+00 : f32
    %6 = vector.broadcast %cst_6 : f32 to vector<2x8xf32>
    %7 = arith.maximumf %5, %6 : vector<2x8xf32>
    %c0_7 = arith.constant 0 : index
    %c0_8 = arith.constant 0 : index
    %8 = vector.load %arg3[%c0_7, %c0_8] : memref<8x128xf32, #tpu.memory_space<vmem>>, vector<8x128xf32>
    %cst_9 = arith.constant dense<0.000000e+00> : vector<2x128xf32>
    %9 = tpu.matmul %7, %8, %cst_9 {dimension_numbers = #tpu.dot_dimension_numbers<[1], [0], [0], [1], [0, 0, 1, 1], [], []>, precision = #tpu.contract_precision<fp32>} : vector<2x8xf32>, vector<8x128xf32>, vector<2x128xf32> -> vector<2x128xf32>
    %10 = arith.negf %9 : vector<2x128xf32>
    %11 = math.exp %10 : vector<2x128xf32>
    %cst_10 = arith.constant 1.000000e+00 : f32
    %12 = vector.broadcast %cst_10 : f32 to vector<2x128xf32>
    %13 = arith.addf %12, %11 : vector<2x128xf32>
    %14 = arith.divf %12, %13 : vector<2x128xf32>
    %15 = vector.shape_cast %14 : vector<2x128xf32> to vector<2x128x1xf32>
    %c0_11 = arith.constant 0 : index
    %c0_12 = arith.constant 0 : index
    %c0_13 = arith.constant 0 : index
    %16 = vector.load %arg1[%c0_11, %c0_12, %c0_13] : memref<2x128x256xf32, #tpu.memory_space<vmem>>, vector<2x128x256xf32>
    %17 = vector.broadcast %15 : vector<2x128x1xf32> to vector<2x128x256xf32>
    %18 = arith.mulf %16, %17 : vector<2x128x256xf32>
    %c0_14 = arith.constant 0 : index
    %c0_15 = arith.constant 0 : index
    %c0_16 = arith.constant 0 : index
    %19 = vector.load %arg4[%c0_14, %c0_15, %c0_16] : memref<2x128x256xf32, #tpu.memory_space<vmem>>, vector<2x128x256xf32>
    tpu.vector_store %arg4[%c0_14, %c0_15, %c0_16], %18 {strides = array<i32>} : memref<2x128x256xf32, #tpu.memory_space<vmem>>, vector<2x128x256xf32>,
    return
  }
  func.func @transform_0(%arg0: i32) -> (i32, i32, i32) {
    %c0_i32 = arith.constant 0 : i32
    %c0_i32_0 = arith.constant 0 : i32
    %c0_i32_1 = arith.constant 0 : i32
    return %arg0, %c0_i32, %c0_i32_0 : i32, i32, i32
  }
  func.func @transform_1(%arg0: i32) -> (i32, i32) {
    %c0_i32 = arith.constant 0 : i32
    %c0_i32_0 = arith.constant 0 : i32
    %c0_i32_1 = arith.constant 0 : i32
    return %c0_i32, %c0_i32_0 : i32, i32
  }
  func.func @transform_2(%arg0: i32) -> (i32, i32) {
    %c0_i32 = arith.constant 0 : i32
    %c0_i32_0 = arith.constant 0 : i32
    %c0_i32_1 = arith.constant 0 : i32
    return %c0_i32, %c0_i32_0 : i32, i32
  }
  func.func @transform_3(%arg0: i32) -> (i32, i32, i32) {
    %c0_i32 = arith.constant 0 : i32
    %c0_i32_0 = arith.constant 0 : i32
    %c0_i32_1 = arith.constant 0 : i32
    return %arg0, %c0_i32, %c0_i32_0 : i32, i32, i32
  }
}

</mosaic_0001>

<bundles_post_ra>
// kernel: squeeze_excite.1
= control target key start
LH: loop header
LB: loop body
LE: loop exit
PB: predicated region body
PF: predicated region fallthrough
CT: control target
= control target key end

     0   :  { %8 = vsyncpa [#allocation3], 0  ;;  %s3692_s0 = inlined_call_operand.hbm [shape: f32[4,128,256], index: 0, kind: input, shape index: {}]   ;;  %s3693_s1 = inlined_call_operand.vmem [shape: f32[128,8], index: 1, kind: input, shape index: {}]   ;;  %s3694_s2 = inlined_call_operand.vmem [shape: f32[8,128], index: 2, kind: input, shape index: {}]   ;;  %s3695_s3 = inlined_call_operand.hbm [shape: f32[4,128,256], index: 3, kind: output, shape index: {}]  }
   0x1   :  { %10 = vsyncpa [#allocation3 + $0x1], 0 }
   0x2   :  { %11 = vsyncpa [#allocation4], 0 }
   0x3   :  { %13 = vsyncpa [#allocation4 + $0x1], 0  ;;  %s2859_s12 = smov 0   ;;  %s2861_s13 = smov 0  }
   0x4   :  { %s2863_s14 = smov 0   ;;  %s2865_s15 = smov 0  }
   0x5 LB: > { %s2880_s16 = sadd.s32 4294967295, %s2828_s15   ;;  %s2074_s17 = sadd.s32 4294967294, %s2828_s15   ;;  %s2828_s15 = sphi %s2865_s15, %s3802_s15   ;;  %s2824_s14 = sphi %s2863_s14, %s3801_s14   ;;  %s2820_s13 = sphi %s2861_s13, %s3800_s13   ;;  %s2816_s12 = sphi %s2859_s12, %s3799_s12  }
   0x6   : > { %s2884_s18 = sadd.s32 1, %s2828_s15   ;;  %s26_s19 = sadd.s32 1, %s2824_s14 }
   0x7   : > { %s23_s20 = ssub.s32 %s2828_s15, %s2884_s18  ;;  %p33_p0 = scmp.ne.s32.totalorder %s2824_s14, %s2820_s13 }
   0x8   : > { %p24_p1 = scmp.eq.s32.totalorder %s23_s20, 0  ;;  %p34_p2 = scmp.eq.s32.totalorder %s2828_s15, 0 }
   0x9   : > { %p39_p3 = scmp.ne.s32.totalorder %s2820_s13, %s2816_s12  ;;  %p40_p4 = scmp.eq.s32.totalorder %s2880_s16, 0 }
   0xa   : > { %s2896_s21 = scalar_select %p24_p1, %s2824_s14, %s26_s19  }
   0xb   : > { %p2898_p5 = por %p34_p2, %p33_p0  ;;  %p2902_p6 = por %p40_p4, %p39_p3 }
   0xc   : > { %p105_p7 = scmp.eq.s32.totalorder %s2880_s16, 1  ;;  %p111_p8 = scmp.eq.s32.totalorder %s2074_s17, 1 }
   0xd   : > { %p2623_p10 = scmp.lt.s32.totalorder %s2828_s15, 2  ;;  %s137_s26 = sand.u32 1, %s2824_s14  }
   0xe   : > { %p2909_p11 = por %p105_p7, %p33_p0  ;;  %p2913_p12 = por %p111_p8, %p39_p3 }
   0xf   : > { %s2092_s27 = sshll.u32 %s2828_s15, 13  ;;  %s2077_s28 = sshll.u32 %s137_s26, 9 }
  0x10   : > { %s3727_s24 = scalar_select %p2909_p11, 1, 0 }
  0x11   : > { %s3728_s25 = scalar_select %p2913_p12, 1, 0 }
  0x12   : > { %s2922_s4 = scalar_lea.hbm %s3692_s0, %s2092_s27  ;;  %s141_s5 = scalar_lea.vmem [#allocation2], %s2077_s28 }
  0x13   : > { %s149_s6 = sshll.u32 %s141_s5, 4  ;;  %p2926_p13 = pnand %p2623_p10, %p2898_p5  ;;  %s2930_s6 = int_to_ptr.vmem [resolvable:$true] %s149_s6 }
  0x14   : > { %s2932_s8 = scalar_lea.sflag [#allocation3], %s137_s26  ;;  %s2732_s9 = scalar_lea.hbm %s2922_s4, 8192 }
  0x15   : > { %p2733_p0 = scmp.ne.s32.totalorder %s2922_s4, %s2732_s9  ;;  %p2734_p1 = pneg %p2926_p13 }
  0x16   : > { %s2737_s17 = scalar_lea.hbm %s3692_s0, 16384  ;;  %p2738_p4 = scmp.lt.u32.totalorder %s2922_s4, %s3692_s0 }
  0x17   : > { %p2735_p2 = pnand %p2734_p1, %p2733_p0  ;;  %p2739_p5 = scmp.lt.u32.totalorder %s2737_s17, %s2732_s9 }
  0x18   : > { %p2741_p8 = scmp.lt.u32.totalorder %s2732_s9, %s2922_s4 }
  0x19   : > { %p2736_p3 = pneg %p2735_p2  ;;  %p2740_p7 = por %p2739_p5, %p2738_p4 }
  0x1b   : > { %p2742_p10 = por %p2741_p8, %p2740_p7 }
  0x1d   : > { %p2743_p9 = pnand %p2742_p10, %p2736_p3 }
  0x1f   : > { %2746 = shalt.err (!%p2743_p9)
}
  0x20   : > { %s2747_s22 = scalar_lea.vmem %s2930_s6, 8192  ;;  %s2830_s26 = smov [#allocation2]  }
  0x21   : > { %p2748_p0 = scmp.ne.s32.totalorder %s2930_s6, %s2747_s22  ;;  %s2752_s27 = sshll.u32 %s2830_s26, 4  ;;  %s2753_s27 = int_to_ptr.vmem [resolvable:$false] %s2752_s27 }
  0x22   : > { %s2754_s28 = scalar_lea.vmem %s2753_s27, 16384  ;;  %p2755_p11 = scmp.lt.s32.totalorder %s2930_s6, %s2753_s27 }
  0x23   : > { %p2750_p2 = pnand %p2748_p0, %p2734_p1  ;;  %p2756_p4 = scmp.lt.s32.totalorder %s2754_s28, %s2747_s22 }
  0x25   : > { %p2751_p12 = pneg %p2750_p2  ;;  %p2757_p5 = por %p2756_p4, %p2755_p11 }
  0x27   : > { %p2758_p7 = pnand %p2757_p5, %p2751_p12 }
  0x29   : > { %2761 = shalt.err (!%p2758_p7)
}
  0x2a   : > { %s2831_s29 = smov 256   ;;  %s2832_s30 = smov 16  }
  0x2b   : > { %2618 = dma.hbm_to_vmem [thread:$0]  (!%p2926_p13), %s2922_s4, 8192, %s2930_s6, %s2932_s8, %s2831_s29, %s2831_s29, %s2832_s30  }
  0x2c   : > { %p2081_p9 = scmp.ge.s32.totalorder %s2828_s15, 1  ;;  %p157_p1 = scmp.lt.s32.totalorder %s2828_s15, 3 }
  0x2e   : > { %p158_p3 = pnand %p2081_p9, %p157_p1 }
  0x30   : > { %161 = sbr.rel (%p158_p3) target bundleno = 1026 (0x402), region = 32 }
  0x37   : > { %s2963_s5 = sand.u32 1, %s2820_s13  }
  0x38   : > { %s2082_s9 = sshll.u32 %s2963_s5, 9  ;;  %s164_s10 = scalar_lea.sflag [#allocation3], %s2963_s5 }
  0x39   : > { %s2969_s11 = scalar_lea.vmem [#allocation2], %s2082_s9 }
  0x3a   : > { %2807 = dma.done.wait (%p2902_p6), %s164_s10, 8192  }
  0x3b   : > { %2809 = vsyncadd (%p2902_p6), %s164_s10, 4294959104  ;;  %v224_v0 = vld [vmem:[%s2969_s11 + $0x100] sm:$0xff]  ;;  %v225_v1 = vld [vmem:[%s2969_s11 + $0x108] sm:$0xff]  ;;  %vm2834_vm0 = vmmov 0   ;;  %vm443_vm1 = vcmask 130112   ;;  %vm450_vm2 = vcmask 195712  }
  0x3c   : > { %v192_v2 = vld [vmem:[%s2969_s11] sm:$0xff]  ;;  %v304_v3 = vadd.f32 %v225_v1, %v224_v0  ;;  %v193_v4 = vld [vmem:[%s2969_s11 + $0x8] sm:$0xff]  ;;  %v226_v5 = vld [vmem:[%s2969_s11 + $0x110] sm:$0xff]  ;;  %vm457_vm3 = vcmask 261312   ;;  %vm464_vm4 = vcmask 326912   ;;  %vm471_vm5 = vcmask 392512  }
  0x3d   : > { %v227_v6 = vld [vmem:[%s2969_s11 + $0x118] sm:$0xff]  ;;  %v256_v7 = vadd.f32 %v193_v4, %v192_v2  ;;  %v194_v8 = vld [vmem:[%s2969_s11 + $0x10] sm:$0xff]  ;;  %v228_v12 = vld [vmem:[%s2969_s11 + $0x120] sm:$0xff]  ;;  %vm478_vm6 = vcmask 458112   ;;  %vm485_vm7 = vcmask 523712   ;;  %vm492_vm8 = vcmask 589312  }
  0x3e   : > { %v195_v9 = vld [vmem:[%s2969_s11 + $0x18] sm:$0xff]  ;;  %305 = vadd.xlane.f32.xlu1 %v304_v3  ;;  %v307_v10 = vadd.f32 %v227_v6, %v226_v5  ;;  %v229_v13 = vld [vmem:[%s2969_s11 + $0x128] sm:$0xff]  ;;  %v196_v14 = vld [vmem:[%s2969_s11 + $0x20] sm:$0xff]  ;;  %vm499_vm9 = vcmask 654912   ;;  %vm506_vm10 = vcmask 720512   ;;  %vm513_vm11 = vcmask 786112  }
  0x3f   : > { %257 = vadd.xlane.f32.xlu0 %v256_v7  ;;  %v259_v11 = vadd.f32 %v195_v9, %v194_v8  ;;  %v197_v15 = vld [vmem:[%s2969_s11 + $0x28] sm:$0xff]  ;;  %v310_v16 = vadd.f32 %v229_v13, %v228_v12  ;;  %v230_v18 = vld [vmem:[%s2969_s11 + $0x130] sm:$0xff]  ;;  %v231_v19 = vld [vmem:[%s2969_s11 + $0x138] sm:$0xff]  ;;  %vm520_vm12 = vcmask 851712   ;;  %vm527_vm13 = vcmask 917312   ;;  %s3515_s8 = scalar_lea.vmem [#allocation5], %s2082_s9 }
  0x40   : > { %v262_v17 = vadd.f32 %v197_v15, %v196_v14  ;;  %v198_v20 = vld [vmem:[%s2969_s11 + $0x30] sm:$0xff]  ;;  %v199_v21 = vld [vmem:[%s2969_s11 + $0x38] sm:$0xff]  ;;  %v313_v22 = vadd.f32 %v231_v19, %v230_v18  ;;  %v232_v24 = vld [vmem:[%s2969_s11 + $0x140] sm:$0xff]  ;;  %vm534_vm14 = vcmask 982912   ;;  %vm541_vm15 = vcmask 1048512   ;;  %s2094_s9 = sshll.u32 %s2880_s16, 13 }
  0x41   : > { %v265_v23 = vadd.f32 %v199_v21, %v198_v20  ;;  %v233_v25 = vld [vmem:[%s2969_s11 + $0x148] sm:$0xff]  ;;  %v200_v26 = vld [vmem:[%s2969_s11 + $0x40] sm:$0xff]  ;;  %v234_v30 = vld [vmem:[%s2969_s11 + $0x150] sm:$0xff]  ;;  %s2001_s17 = sshll.u32 %s3515_s8, 4  ;;  %s3642_s22 = scalar_lea.hbm %s3695_s3, %s2094_s9  ;;  %s3644_s17 = int_to_ptr.vmem [resolvable:$true] %s2001_s17 }
  0x42   : > { %308 = vadd.xlane.f32.xlu1 %v307_v10  ;;  %v201_v27 = vld [vmem:[%s2969_s11 + $0x48] sm:$0xff]  ;;  %v316_v28 = vadd.f32 %v233_v25, %v232_v24  ;;  %v235_v31 = vld [vmem:[%s2969_s11 + $0x158] sm:$0xff]  ;;  %v202_v32 = vld [vmem:[%s2969_s11 + $0x50] sm:$0xff]  ;;  %s1987_s16 = scalar_lea.sflag [#allocation4], %s2963_s5  ;;  %s2762_s26 = scalar_lea.vmem %s3644_s17, 8192 }
  0x43   : > { %260 = vadd.xlane.f32.xlu0 %v259_v11  ;;  %v268_v29 = vadd.f32 %v201_v27, %v200_v26  ;;  %v203_v33 = vld [vmem:[%s2969_s11 + $0x58] sm:$0xff]  ;;  %v319_v34 = vadd.f32 %v235_v31, %v234_v30  ;;  %v236_v36 = vld [vmem:[%s2969_s11 + $0x160] sm:$0xff]  ;;  %v237_v37 = vld [vmem:[%s2969_s11 + $0x168] sm:$0xff]  ;;  %p2763_p6 = scmp.ne.s32.totalorder %s3644_s17, %s2762_s26  ;;  %p3796_p11 = scmp.ne.s32.totalorder %s3727_s24, 0 }
  0x44   : > { %v271_v35 = vadd.f32 %v203_v33, %v202_v32  ;;  %v204_v38 = vld [vmem:[%s2969_s11 + $0x60] sm:$0xff]  ;;  %v205_v39 = vld [vmem:[%s2969_s11 + $0x68] sm:$0xff]  ;;  %v322_v40 = vadd.f32 %v237_v37, %v236_v36  ;;  %v238_v42 = vld [vmem:[%s2969_s11 + $0x170] sm:$0xff]  ;;  %s2836_s27 = smov [#allocation5]  }
  0x45   : > { %v274_v41 = vadd.f32 %v205_v39, %v204_v38  ;;  %v239_v43 = vld [vmem:[%s2969_s11 + $0x178] sm:$0xff]  ;;  %v206_v44 = vld [vmem:[%s2969_s11 + $0x70] sm:$0xff]  ;;  %v240_v48 = vld [vmem:[%s2969_s11 + $0x180] sm:$0xff]  ;;  %p2764_p12 = pnand %p2763_p6, %p3796_p11  ;;  %s2766_s28 = sshll.u32 %s2836_s27, 4  ;;  %s2767_s28 = int_to_ptr.vmem [resolvable:$false] %s2766_s28 }
  0x46   : > { %311 = vadd.xlane.f32.xlu1 %v310_v16  ;;  %v207_v45 = vld [vmem:[%s2969_s11 + $0x78] sm:$0xff]  ;;  %v325_v46 = vadd.f32 %v239_v43, %v238_v42  ;;  %v241_v49 = vld [vmem:[%s2969_s11 + $0x188] sm:$0xff]  ;;  %v208_v50 = vld [vmem:[%s2969_s11 + $0x80] sm:$0xff]  ;;  %s2768_s29 = scalar_lea.vmem %s2767_s28, 16384  ;;  %p2769_p8 = scmp.lt.s32.totalorder %s3644_s17, %s2767_s28 }
  0x47   : > { %263 = vadd.xlane.f32.xlu0 %v262_v17  ;;  %v277_v47 = vadd.f32 %v207_v45, %v206_v44  ;;  %v209_v51 = vld [vmem:[%s2969_s11 + $0x88] sm:$0xff]  ;;  %v328_v52 = vadd.f32 %v241_v49, %v240_v48  ;;  %v242_v54 = vld [vmem:[%s2969_s11 + $0x190] sm:$0xff]  ;;  %v243_v55 = vld [vmem:[%s2969_s11 + $0x198] sm:$0xff]  ;;  %p2765_p13 = pneg %p2764_p12  ;;  %p2770_p10 = scmp.lt.s32.totalorder %s2768_s29, %s2762_s26 }
  0x48   : > { %v280_v53 = vadd.f32 %v209_v51, %v208_v50  ;;  %v210_v56 = vld [vmem:[%s2969_s11 + $0x90] sm:$0xff]  ;;  %v211_v57 = vld [vmem:[%s2969_s11 + $0x98] sm:$0xff]  ;;  %v331_v58 = vadd.f32 %v243_v55, %v242_v54  ;;  %v244_v60 = vld [vmem:[%s2969_s11 + $0x1a0] sm:$0xff] }
  0x49   : > { %v283_v59 = vadd.f32 %v211_v57, %v210_v56  ;;  %v245_v61 = vld [vmem:[%s2969_s11 + $0x1a8] sm:$0xff]  ;;  %v212_v62 = vld [vmem:[%s2969_s11 + $0xa0] sm:$0xff]  ;;  %v246_v2 = vld [vmem:[%s2969_s11 + $0x1b0] sm:$0xff]  ;;  %p2771_p0 = por %p2770_p10, %p2769_p8 }
  0x4a   : > { %314 = vadd.xlane.f32.xlu1 %v313_v22  ;;  %v213_v63 = vld [vmem:[%s2969_s11 + $0xa8] sm:$0xff]  ;;  %v334_v0 = vadd.f32 %v245_v61, %v244_v60  ;;  %v247_v3 = vld [vmem:[%s2969_s11 + $0x1b8] sm:$0xff]  ;;  %v214_v4 = vld [vmem:[%s2969_s11 + $0xb0] sm:$0xff] }
  0x4b   : > { %266 = vadd.xlane.f32.xlu0 %v265_v23  ;;  %v286_v1 = vadd.f32 %v213_v63, %v212_v62  ;;  %v215_v5 = vld [vmem:[%s2969_s11 + $0xb8] sm:$0xff]  ;;  %v337_v6 = vadd.f32 %v247_v3, %v246_v2  ;;  %v248_v8 = vld [vmem:[%s2969_s11 + $0x1c0] sm:$0xff]  ;;  %v249_v9 = vld [vmem:[%s2969_s11 + $0x1c8] sm:$0xff]  ;;  %p2772_p2 = pnand %p2771_p0, %p2765_p13 }
  0x4c   : > { %v289_v7 = vadd.f32 %v215_v5, %v214_v4  ;;  %v216_v10 = vld [vmem:[%s2969_s11 + $0xc0] sm:$0xff]  ;;  %v217_v11 = vld [vmem:[%s2969_s11 + $0xc8] sm:$0xff]  ;;  %v340_v12 = vadd.f32 %v249_v9, %v248_v8  ;;  %v250_v14 = vld [vmem:[%s2969_s11 + $0x1d0] sm:$0xff] }
  0x4d   : > { %v292_v13 = vadd.f32 %v217_v11, %v216_v10  ;;  %v251_v15 = vld [vmem:[%s2969_s11 + $0x1d8] sm:$0xff]  ;;  %v218_v16 = vld [vmem:[%s2969_s11 + $0xd0] sm:$0xff]  ;;  %v252_v20 = vld [vmem:[%s2969_s11 + $0x1e0] sm:$0xff] }
  0x4e   : > { %317 = vadd.xlane.f32.xlu1 %v316_v28  ;;  %v219_v17 = vld [vmem:[%s2969_s11 + $0xd8] sm:$0xff]  ;;  %v343_v18 = vadd.f32 %v251_v15, %v250_v14  ;;  %v253_v21 = vld [vmem:[%s2969_s11 + $0x1e8] sm:$0xff]  ;;  %v220_v22 = vld [vmem:[%s2969_s11 + $0xe0] sm:$0xff] }
  0x4f   : > { %269 = vadd.xlane.f32.xlu0 %v268_v29  ;;  %v295_v19 = vadd.f32 %v219_v17, %v218_v16  ;;  %v221_v23 = vld [vmem:[%s2969_s11 + $0xe8] sm:$0xff]  ;;  %v384_v24 = vld [vmem:[%s3693_s1] sm:$0xff]  ;;  %v346_v28 = vadd.f32 %v253_v21, %v252_v20  ;;  %v254_v30 = vld [vmem:[%s2969_s11 + $0x1f0] sm:$0xff] }
  0x50   : > { %v385_v25 = vld [vmem:[%s3693_s1 + $0x8] sm:$0xff]  ;;  %v626_v26 = vand.u32 4294901760, %v384_v24  ;;  %v298_v29 = vadd.f32 %v221_v23, %v220_v22  ;;  %v255_v31 = vld [vmem:[%s2969_s11 + $0x1f8] sm:$0xff]  ;;  %v222_v32 = vld [vmem:[%s2969_s11 + $0xf0] sm:$0xff] }
  0x51   : > { %v629_v27 = vand.u32 4294901760, %v385_v25  ;;  %v386_v36 = vld [vmem:[%s3693_s1 + $0x10] sm:$0xff]  ;;  %v387_v37 = vld [vmem:[%s3693_s1 + $0x18] sm:$0xff]  ;;  %v388_v43 = vld [vmem:[%s3693_s1 + $0x20] sm:$0xff] }
  0x52   : > { %320 = vadd.xlane.f32.xlu1 %v319_v34  ;;  %v223_v34 = vld [vmem:[%s2969_s11 + $0xf8] sm:$0xff]  ;;  %v632_v38 = vand.u32 4294901760, %v386_v36  ;;  %v635_v39 = vand.u32 4294901760, %v387_v37  ;;  %v389_v44 = vld [vmem:[%s3693_s1 + $0x28] sm:$0xff]  ;;  %v3067_v45 = vsub.f32 %v384_v24, %v626_v26  ;;  %v390_v50 = vld [vmem:[%s3693_s1 + $0x30] sm:$0xff] }
  0x53   : > { %272 = vadd.xlane.f32.xlu0 %v271_v35  ;;  %v3044_v33 = vpack.c.bf16 %v629_v27, %v626_v26  ;;  %v3697_v35 = vmov 0.0|0.0   ;;  %v641_v48 = vand.u32 4294901760, %v389_v44  ;;  %v391_v51 = vld [vmem:[%s3693_s1 + $0x38] sm:$0xff]  ;;  %v644_v54 = vand.u32 4294901760, %v390_v50  ;;  %v392_v57 = vld [vmem:[%s3693_s1 + $0x40] sm:$0xff]  ;;  %v397_v8 = vld [vmem:[%s3693_s1 + $0x68] sm:$0xff] }
  0x54   : > { %2521 = vmatprep.subr.bf16.mxu0 %v3697_v35  ;;  %2449 = vmatprep.subr.bf16.mxu1 %v3697_v35  ;;  %v3058_v42 = vpack.c.bf16 %v635_v39, %v632_v38  ;;  %3732 = vst [vmem:[#allocation10_spill] sm:$0xff] %v3067_v45  ;;  %v647_v55 = vand.u32 4294901760, %v391_v51  ;;  %v650_v61 = vand.u32 4294901760, %v392_v57  ;;  %v398_v14 = vld [vmem:[%s3693_s1 + $0x70] sm:$0xff]  ;;  %v399_v15 = vld [vmem:[%s3693_s1 + $0x78] sm:$0xff] }
  0x55   : > { %3730 = vst [vmem:[#allocation8_spill] sm:$0xff] %v3044_v33  ;;  %2523 = vmatpush3.bf16.msra.mxu0 %v3044_v33  ;;  %2451 = vmatpush3.bf16.msra.mxu1 %v3044_v33  ;;  %v3101_v60 = vsub.f32 %v389_v44, %v641_v48  ;;  %v3115_v2 = vsub.f32 %v390_v50, %v644_v54  ;;  %v668_v16 = vand.u32 4294901760, %v398_v14  ;;  %v671_v17 = vand.u32 4294901760, %v399_v15 }
  0x56   : > { %323 = vadd.xlane.f32.xlu1 %v322_v40  ;;  %v349_v40 = vadd.f32 %v255_v31, %v254_v30  ;;  %2524 = vmatprep.subr.bf16.mxu0 %v3697_v35  ;;  %3731 = vst [vmem:[#allocation9_spill] sm:$0xff] %v3058_v42  ;;  %v3091_v56 = vpack.c.bf16 %v647_v55, %v644_v54 }
  0x57   : > { %275 = vadd.xlane.f32.xlu0 %v274_v41  ;;  %v301_v41 = vadd.f32 %v223_v34, %v222_v32  ;;  %2452 = vmatprep.subr.bf16.mxu1 %v3697_v35  ;;  %3739 = vst [vmem:[#allocation17_spill] sm:$0xff] %v3101_v60  ;;  %3741 = vst [vmem:[#allocation19_spill] sm:$0xff] %v3115_v2  ;;  %v3117_v3 = vsub.f32 %v391_v51, %v647_v55 }
  0x58   : > { %3737 = vst [vmem:[#allocation15_spill] sm:$0xff] %v3091_v56  ;;  %v3131_v9 = vsub.f32 %v392_v57, %v650_v61  ;;  %v3158_v22 = vpack.c.bf16 %v671_v17, %v668_v16  ;;  %v3160_v23 = vsub.f32 %v398_v14, %v668_v16  ;;  %v3162_v24 = vsub.f32 %v399_v15, %v671_v17 }
  0x59   : > { %2526 = vmatpush3.bf16.msra.mxu0 %v3058_v42  ;;  %2454 = vmatpush3.bf16.msra.mxu1 %v3058_v42  ;;  %3742 = vst [vmem:[#allocation20_spill] sm:$0xff] %v3117_v3 }
  0x5a   : > { %326 = vadd.xlane.f32.xlu1 %v325_v46  ;;  %v3069_v46 = vsub.f32 %v385_v25, %v629_v27  ;;  %2527 = vmatprep.subr.bf16.mxu0 %v3697_v35  ;;  %3744 = vst [vmem:[#allocation22_spill] sm:$0xff] %v3131_v9  ;;  %3751 = vst [vmem:[#allocation29_spill] sm:$0xff] %v3158_v22  ;;  %v719_v25 = vand.u32 4294901760, %v3067_v45  ;;  %v3699_v27 = vmov 0.0  }
  0x5b   : > { %278 = vadd.xlane.f32.xlu0 %v277_v47  ;;  %v638_v47 = vand.u32 4294901760, %v388_v43  ;;  %2455 = vmatprep.subr.bf16.mxu1 %v3697_v35  ;;  %3752 = vst [vmem:[#allocation30_spill] sm:$0xff] %v3160_v23  ;;  %3753 = vst [vmem:[#allocation31_spill] sm:$0xff] %v3162_v24 }
  0x5c   : > { %3733 = vst [vmem:[#allocation11_spill] sm:$0xff] %v3069_v46  ;;  %v726_v26 = vand.u32 4294901760, %v3069_v46  ;;  %2346 = vmatprep.mubr.msk.f32.mxu0 %vm2834_vm0, %v3699_v27  ;;  %2241 = vmatprep.mubr.msk.f32.mxu1 %vm2834_vm0, %v3699_v27 }
  0x5d   : > { %v3075_v49 = vpack.c.bf16 %v641_v48, %v638_v47 }
  0x5e   : > { %329 = vadd.xlane.f32.xlu1 %v328_v52  ;;  %v3083_v52 = vsub.f32 %v386_v36, %v632_v38  ;;  %v727_v30 = vsub.f32 %v3069_v46, %v726_v26 }
  0x5f   : > { %281 = vadd.xlane.f32.xlu0 %v280_v53  ;;  %3734 = vst [vmem:[#allocation12_spill] sm:$0xff] %v3075_v49  ;;  %v3085_v53 = vsub.f32 %v387_v37, %v635_v39  ;;  %2529 = vmatpush3.bf16.msra.mxu0 %v3075_v49 }
  0x60   : > { %3735 = vst [vmem:[#allocation13_spill] sm:$0xff] %v3083_v52  ;;  %2457 = vmatpush3.bf16.msra.mxu1 %v3075_v49  ;;  %2530 = vmatprep.subr.bf16.mxu0 %v3697_v35  ;;  %v728_v32 = vand.u32 4294901760, %v727_v30  ;;  %v733_v34 = vand.u32 4294901760, %v3083_v52 }
  0x61   : > { %3736 = vst [vmem:[#allocation14_spill] sm:$0xff] %v3085_v53  ;;  %2458 = vmatprep.subr.bf16.mxu1 %v3697_v35  ;;  %v740_v36 = vand.u32 4294901760, %v3085_v53 }
  0x62   : > { %332 = vadd.xlane.f32.xlu1 %v331_v58  ;;  %v393_v58 = vld [vmem:[%s3693_s1 + $0x48] sm:$0xff]  ;;  %v734_v39 = vsub.f32 %v3083_v52, %v733_v34 }
  0x63   : > { %284 = vadd.xlane.f32.xlu0 %v283_v59  ;;  %v3099_v59 = vsub.f32 %v388_v43, %v638_v47  ;;  %2532 = vmatpush3.bf16.msra.mxu0 %v3091_v56  ;;  %v653_v62 = vand.u32 4294901760, %v393_v58  ;;  %v3183_v38 = vpack.c.bf16 %v740_v36, %v733_v34  ;;  %v754_v47 = vand.u32 4294901760, %v3101_v60 }
  0x64   : > { %2460 = vmatpush3.bf16.msra.mxu1 %v3091_v56  ;;  %2533 = vmatprep.subr.bf16.mxu0 %v3697_v35 }
  0x65   : > { %3738 = vst [vmem:[#allocation16_spill] sm:$0xff] %v3099_v59  ;;  %2461 = vmatprep.subr.bf16.mxu1 %v3697_v35  ;;  %v3107_v63 = vpack.c.bf16 %v653_v62, %v650_v61  ;;  %v3133_v10 = vsub.f32 %v393_v58, %v653_v62  ;;  %v747_v44 = vand.u32 4294901760, %v3099_v59  ;;  %v755_v54 = vsub.f32 %v3101_v60, %v754_v47 }
  0x66   : > { %335 = vadd.xlane.f32.xlu1 %v334_v0  ;;  %v394_v0 = vld [vmem:[%s3693_s1 + $0x50] sm:$0xff]  ;;  %v761_v58 = vand.u32 4294901760, %v3115_v2  ;;  %v768_v61 = vand.u32 4294901760, %v3117_v3 }
  0x67   : > { %287 = vadd.xlane.f32.xlu0 %v286_v1  ;;  %3740 = vst [vmem:[#allocation18_spill] sm:$0xff] %v3107_v63  ;;  %v395_v1 = vld [vmem:[%s3693_s1 + $0x58] sm:$0xff]  ;;  %2535 = vmatpush3.bf16.msra.mxu0 %v3107_v63  ;;  %v656_v4 = vand.u32 4294901760, %v394_v0  ;;  %3745 = vst [vmem:[#allocation23_spill] sm:$0xff] %v3133_v10  ;;  %v3191_v50 = vpack.c.bf16 %v754_v47, %v747_v44  ;;  %v748_v51 = vsub.f32 %v3099_v59, %v747_v44 }
  0x68   : > { %2463 = vmatpush3.bf16.msra.mxu1 %v3107_v63  ;;  %v659_v5 = vand.u32 4294901760, %v395_v1  ;;  %2536 = vmatprep.subr.bf16.mxu0 %v3697_v35  ;;  %v756_v57 = vand.u32 4294901760, %v755_v54 }
  0x69   : > { %2464 = vmatprep.subr.bf16.mxu1 %v3697_v35  ;;  %v749_v55 = vand.u32 4294901760, %v748_v51 }
  0x6a   : > { %338 = vadd.xlane.f32.xlu1 %v337_v6  ;;  %v3123_v6 = vpack.c.bf16 %v659_v5, %v656_v4 }
  0x6b   : > { %290 = vadd.xlane.f32.xlu0 %v289_v7  ;;  %v396_v7 = vld [vmem:[%s3693_s1 + $0x60] sm:$0xff]  ;;  %v3197_v62 = vpack.c.bf16 %v756_v57, %v749_v55  ;;  %v817_v57 = vand.u32 4294901760, %v3160_v23 }
  0x6c   : > { %3743 = vst [vmem:[#allocation21_spill] sm:$0xff] %v3123_v6  ;;  %2538 = vmatpush3.bf16.msra.mxu0 %v3123_v6  ;;  %2466 = vmatpush3.bf16.msra.mxu1 %v3123_v6  ;;  %v662_v11 = vand.u32 4294901760, %v396_v7 }
  0x6d   : > { %2539 = vmatprep.subr.bf16.mxu0 %v3697_v35  ;;  %2467 = vmatprep.subr.bf16.mxu1 %v3697_v35 }
  0x6e   : > { %341 = vadd.xlane.f32.xlu1 %v340_v12  ;;  %v665_v12 = vand.u32 4294901760, %v397_v8  ;;  %v3153_v20 = vsub.f32 %v396_v7, %v662_v11 }
  0x6f   : > { %293 = vadd.xlane.f32.xlu0 %v292_v13 }
  0x70   : > { %v3139_v13 = vpack.c.bf16 %v665_v12, %v662_v11  ;;  %3749 = vst [vmem:[#allocation27_spill] sm:$0xff] %v3153_v20  ;;  %v3155_v21 = vsub.f32 %v397_v8, %v665_v12  ;;  %v775_v8 = vand.u32 4294901760, %v3131_v9  ;;  %v782_v11 = vand.u32 4294901760, %v3133_v10 }
  0x72   : > { %344 = vadd.xlane.f32.xlu1 %v343_v18  ;;  %3746 = vst [vmem:[#allocation24_spill] sm:$0xff] %v3139_v13  ;;  %2541 = vmatpush3.bf16.msra.mxu0 %v3139_v13  ;;  %v3149_v18 = vsub.f32 %v394_v0, %v656_v4  ;;  %3750 = vst [vmem:[#allocation28_spill] sm:$0xff] %v3155_v21  ;;  %v3199_v0 = vpack.c.bf16 %v768_v61, %v761_v58 }
  0x73   : > { %296 = vadd.xlane.f32.xlu0 %v295_v19  ;;  %2469 = vmatpush3.bf16.msra.mxu1 %v3139_v13  ;;  %v3151_v19 = vsub.f32 %v395_v1, %v659_v5  ;;  %v762_v1 = vsub.f32 %v3115_v2, %v761_v58  ;;  %v769_v4 = vsub.f32 %v3117_v3, %v768_v61  ;;  %v824_v58 = vand.u32 4294901760, %v3162_v24 }
  0x74   : > { %3747 = vst [vmem:[#allocation25_spill] sm:$0xff] %v3149_v18  ;;  %2542 = vmatprep.subr.bf16.mxu0 %v3697_v35  ;;  %2470 = vmatprep.subr.bf16.mxu1 %v3697_v35  ;;  %v3207_v14 = vpack.c.bf16 %v782_v11, %v775_v8  ;;  %v776_v15 = vsub.f32 %v3131_v9, %v775_v8 }
  0x75   : > { %3748 = vst [vmem:[#allocation26_spill] sm:$0xff] %v3151_v19  ;;  %v763_v5 = vand.u32 4294901760, %v762_v1  ;;  %v770_v7 = vand.u32 4294901760, %v769_v4  ;;  %v783_v16 = vsub.f32 %v3133_v10, %v782_v11  ;;  %v3231_v1 = vpack.c.bf16 %v824_v58, %v817_v57 }
  0x76   : > { %347 = vadd.xlane.f32.xlu1 %v346_v28  ;;  %2544 = vmatpush3.bf16.msra.mxu0 %v3158_v22  ;;  %v3172_v28 = vpack.c.bf16 %v726_v26, %v719_v25  ;;  %v777_v17 = vand.u32 4294901760, %v776_v15  ;;  %v789_v26 = vand.u32 4294901760, %v3149_v18  ;;  %v818_v4 = vsub.f32 %v3160_v23, %v817_v57 }
  0x77   : > { %299 = vadd.xlane.f32.xlu0 %v298_v29  ;;  %2545 = vmatprep.subr.bf16.mxu0 %v3697_v35  ;;  %v720_v29 = vsub.f32 %v3067_v45, %v719_v25  ;;  %v3205_v12 = vpack.c.bf16 %v770_v7, %v763_v5  ;;  %v784_v25 = vand.u32 4294901760, %v783_v16  ;;  %3756 = vst [vmem:[#allocation34_spill] sm:$0xff] %v3231_v1 }
  0x78   : > { %2472 = vmatpush3.bf16.msra.mxu1 %v3158_v22  ;;  %v825_v5 = vsub.f32 %v3162_v24, %v824_v58  ;;  %v819_v7 = vand.u32 4294901760, %v818_v4 }
  0x79   : > { %2473 = vmatprep.subr.bf16.mxu1 %v3697_v35  ;;  %v721_v31 = vand.u32 4294901760, %v720_v29  ;;  %v796_v29 = vand.u32 4294901760, %v3151_v19  ;;  %v3213_v30 = vpack.c.bf16 %v784_v25, %v777_v17 }
  0x7a   : > { %350 = vadd.xlane.f32.xlu1 %v349_v40  ;;  %v741_v40 = vsub.f32 %v3085_v53, %v740_v36  ;;  %v826_v8 = vand.u32 4294901760, %v825_v5 }
  0x7b   : > { %302 = vadd.xlane.f32.xlu0 %v301_v41  ;;  %v3181_v37 = vpack.c.bf16 %v728_v32, %v721_v31  ;;  %v735_v41 = vand.u32 4294901760, %v734_v39  ;;  %v3215_v31 = vpack.c.bf16 %v796_v29, %v789_v26  ;;  %v790_v32 = vsub.f32 %v3149_v18, %v789_v26 }
  0x7c   : > { %v742_v43 = vand.u32 4294901760, %v741_v40  ;;  %v797_v34 = vsub.f32 %v3151_v19, %v796_v29  ;;  %v803_v40 = vand.u32 4294901760, %v3153_v20  ;;  %v3235_v11 = vpack.c.bf16 %v826_v8, %v819_v7 }
  0x7d   : > { %v791_v36 = vand.u32 4294901760, %v790_v32  ;;  %v432_v32 = vlaneseq }
  0x7e   : > { %v3189_v48 = vpack.c.bf16 %v742_v43, %v735_v41  ;;  %v798_v39 = vand.u32 4294901760, %v797_v34  ;;  %v810_v41 = vand.u32 4294901760, %v3155_v21  ;;  %v804_v47 = vsub.f32 %v3153_v20, %v803_v40  ;;  %3757 = vst [vmem:[#allocation35_spill] sm:$0xff] %v3235_v11 }
  0x7f   : > { %v433_v25 = vand.u32 127, %v432_v32  ;;  %v3265_v17 = vshrl.u32 %v432_v32, 7 }
  0x80   : > { %v3221_v43 = vpack.c.bf16 %v798_v39, %v791_v36  ;;  %v3223_v44 = vpack.c.bf16 %v810_v41, %v803_v40  ;;  %v811_v51 = vsub.f32 %v3155_v21, %v810_v41  ;;  %v805_v54 = vand.u32 4294901760, %v804_v47 }
  0x81   : > { %v445_v16 = vadd.s32 4294967280, %v433_v25  ;;  %v452_v35 = vadd.s32 4294967272, %v433_v25  ;;  %v459_v27 = vadd.s32 4294967264, %v433_v25  ;;  %v466_v24 = vadd.s32 4294967256, %v433_v25 }
  0x82   : > { %3754 = vst [vmem:[#allocation32_spill] sm:$0xff] %v3223_v44  ;;  %v812_v55 = vand.u32 4294901760, %v811_v51  ;;  %v438_v51 = vadd.s32 4294967288, %v433_v25  ;;  %v473_v22 = vadd.s32 4294967248, %v433_v25  ;;  %v480_v20 = vadd.s32 4294967240, %v433_v25 }
  0x83   : > { %v3272_v21 = vsub.s32 %v433_v25, %v3265_v17  ;;  %v487_v13 = vadd.s32 4294967232, %v433_v25  ;;  %v494_v18 = vadd.s32 4294967224, %v433_v25  ;;  %v501_v19 = vadd.s32 4294967216, %v433_v25 }
  0x84   : > { %v3229_v61 = vpack.c.bf16 %v812_v55, %v805_v54  ;;  %v441_v32 = vsub.s32 %v438_v51, %v3265_v17  ;;  %v3276_v6 = vsub.s32 %v445_v16, %v3265_v17  ;;  %v508_v10 = vadd.s32 4294967208, %v433_v25 }
  0x85   : > { %v3281_v63 = vsub.s32 %v452_v35, %v3265_v17  ;;  %v3284_v2 = vsub.s32 %v459_v27, %v3265_v17  ;;  %v515_v56 = vadd.s32 4294967200, %v433_v25  ;;  %v3289_v51 = vsub.s32 %v466_v24, %v3265_v17 }
  0x86   : > { %3755 = vst [vmem:[#allocation33_spill] sm:$0xff] %v3229_v61  ;;  %v3292_v16 = vsub.s32 %v473_v22, %v3265_v17  ;;  %v3295_v59 = vsub.s32 %v480_v20, %v3265_v17  ;;  %v522_v60 = vadd.s32 4294967192, %v433_v25  ;;  %v3298_v35 = vsub.s32 %v487_v13, %v3265_v17 }
  0x87   : > { %v3301_v27 = vsub.s32 %v494_v18, %v3265_v17  ;;  %v3304_v52 = vsub.s32 %v501_v19, %v3265_v17  ;;  %v3307_v42 = vsub.s32 %v508_v10, %v3265_v17  ;;  %v529_v20 = vadd.s32 4294967184, %v433_v25 }
  0x88   : > { %v3310_v13 = vsub.s32 %v515_v56, %v3265_v17  ;;  %v536_v61 = vadd.s32 4294967176, %v433_v25 }
  0x89   : > { %v3319_v56 = vsub.s32 %v529_v20, %v3265_v17 }
  0xcb   : > { %v306_v29 = vpop.xlane.xlu1 %305 }
  0xcc   : > { %v3249_v34 = vpop.xlane.xlu0 %257  ;;  %v368_v45 = vmul.f32 0.00390625, %v306_v29 }
  0xcd   : > { %v352_v18 = vmul.f32 0.00390625, %v3249_v34 }
  0xce   : > { %v546_v34 = vrot.slane %v368_v45, %v3272_v21 }
  0xcf   : > { %v309_v36 = vpop.xlane.xlu1 %308  ;;  %v437_v25 = vrot.slane %v352_v18, %v3272_v21 }
  0xd0   : > { %v261_v40 = vpop.xlane.xlu0 %260  ;;  %v369_v49 = vmul.f32 0.00390625, %v309_v36 }
  0xd1   : > { %v353_v24 = vmul.f32 0.00390625, %v261_v40  ;;  %v3314_v40 = vsub.s32 %v522_v60, %v3265_v17 }
  0xd3   : > { %v312_v41 = vpop.xlane.xlu1 %311  ;;  %v442_v44 = vrot.slane %v353_v24, %v441_v32 }
  0xd4   : > { %v264_v47 = vpop.xlane.xlu0 %263  ;;  %v370_v53 = vmul.f32 0.00390625, %v312_v41  ;;  %v550_v41 = vrot.slane %v369_v49, %v441_v32 }
  0xd5   : > { %v354_v36 = vmul.f32 0.00390625, %v264_v47 }
  0xd6   : > { %v555_v29 = vrot.slane %v370_v53, %v3276_v6 }
  0xd7   : > { %v315_v54 = vpop.xlane.xlu1 %314 }
  0xd8   : > { %v267_v55 = vpop.xlane.xlu0 %266  ;;  %v371_v46 = vmul.f32 0.00390625, %v315_v54 }
  0xd9   : > { %v355_v11 = vmul.f32 0.00390625, %v267_v55  ;;  %v449_v55 = vrot.slane %v354_v36, %v3276_v6 }
  0xda   : > { %v560_v60 = vrot.slane %v371_v46, %v3281_v63  ;;  %v3333_v46 = vsub.s32 %v536_v61, %v3265_v17 }
  0xdb   : > { %v318_v57 = vpop.xlane.xlu1 %317  ;;  %v456_v53 = vrot.slane %v355_v11, %v3281_v63 }
  0xdc   : > { %v270_v58 = vpop.xlane.xlu0 %269  ;;  %v372_v19 = vmul.f32 0.00390625, %v318_v57 }
  0xdd   : > { %v356_v1 = vmul.f32 0.00390625, %v270_v58 }
  0xde   : > { %v565_v58 = vrot.slane %v372_v19, %v3284_v2 }
  0xdf   : > { %v321_v4 = vpop.xlane.xlu1 %320  ;;  %v463_v45 = vrot.slane %v356_v1, %v3284_v2 }
  0xe0   : > { %v3255_v5 = vpop.xlane.xlu0 %272  ;;  %v373_v10 = vmul.f32 0.00390625, %v321_v4 }
  0xe1   : > { %v357_v47 = vmul.f32 0.00390625, %v3255_v5  ;;  %v551_v5 = vsel %vm443_vm1, %v550_v41, %v546_v34 }
  0xe2   : > { %v570_v6 = vrot.slane %v373_v10, %v3289_v51  ;;  %v556_v21 = vsel %vm450_vm2, %v555_v29, %v551_v5 }
  0xe3   : > { %v3257_v7 = vpop.xlane.xlu1 %323  ;;  %v470_v63 = vrot.slane %v357_v47, %v3289_v51  ;;  %v561_v2 = vsel %vm457_vm3, %v560_v60, %v556_v21 }
  0xe4   : > { %v3259_v8 = vpop.xlane.xlu0 %275  ;;  %v374_v49 = vmul.f32 0.00390625, %v3257_v7  ;;  %v444_v7 = vsel %vm443_vm1, %v442_v44, %v437_v25  ;;  %v566_v20 = vsel %vm464_vm4, %v565_v58, %v561_v2  ;;  %vm622_vm1 = vcmask 1041409  }
  0xe5   : > { %v358_v4 = vmul.f32 0.00390625, %v3259_v8  ;;  %v451_v32 = vsel %vm450_vm2, %v449_v55, %v444_v7  ;;  %v571_v18 = vsel %vm471_vm5, %v570_v6, %v566_v20  ;;  %vm1268_vm2 = vcmask 64512  }
  0xe6   : > { %v575_v1 = vrot.slane %v374_v49, %v3292_v16  ;;  %v458_v44 = vsel %vm457_vm3, %v456_v53, %v451_v32 }
  0xe7   : > { %v3261_v26 = vpop.xlane.xlu1 %326  ;;  %v477_v51 = vrot.slane %v358_v4, %v3292_v16  ;;  %v465_v36 = vsel %vm464_vm4, %v463_v45, %v458_v44 }
  0xe8   : > { %v3263_v39 = vpop.xlane.xlu0 %278  ;;  %v375_v11 = vmul.f32 0.00390625, %v3261_v26 }
  0xe9   : > { %v359_v24 = vmul.f32 0.00390625, %v3263_v39  ;;  %v472_v39 = vsel %vm471_vm5, %v470_v63, %v465_v36 }
  0xea   : > { %v580_v10 = vrot.slane %v375_v11, %v3295_v59 }
  0xeb   : > { %v3267_v15 = vpop.xlane.xlu1 %329  ;;  %v484_v34 = vrot.slane %v359_v24, %v3295_v59 }
  0xec   : > { %v3269_v23 = vpop.xlane.xlu0 %281  ;;  %v376_v26 = vmul.f32 0.00390625, %v3267_v15  ;;  %v576_v15 = vsel %vm478_vm6, %v575_v1, %v571_v18 }
  0xed   : > { %v360_v19 = vmul.f32 0.00390625, %v3269_v23  ;;  %v581_v5 = vsel %vm485_vm7, %v580_v10, %v576_v15 }
  0xee   : > { %v585_v23 = vrot.slane %v376_v26, %v3298_v35 }
  0xef   : > { %v3278_v9 = vpop.xlane.xlu1 %332  ;;  %v491_v58 = vrot.slane %v360_v19, %v3298_v35 }
  0xf0   : > { %v3286_v3 = vpop.xlane.xlu0 %284  ;;  %v377_v41 = vmul.f32 0.00390625, %v3278_v9  ;;  %v479_v9 = vsel %vm478_vm6, %v477_v51, %v472_v39  ;;  %v586_v63 = vsel %vm492_vm8, %v585_v23, %v581_v5 }
  0xf1   : > { %v361_v29 = vmul.f32 0.00390625, %v3286_v3  ;;  %v486_v6 = vsel %vm485_vm7, %v484_v34, %v479_v9 }
  0xf2   : > { %v590_v3 = vrot.slane %v377_v41, %v3301_v27 }
  0xf3   : > { %v336_v22 = vpop.xlane.xlu1 %335  ;;  %v498_v59 = vrot.slane %v361_v29, %v3301_v27  ;;  %v493_v27 = vsel %vm492_vm8, %v491_v58, %v486_v6  ;;  %v3780_v6 = vld [vmem:[#allocation18_spill] sm:$0xff] }
  0xf4   : > { %v288_v33 = vpop.xlane.xlu0 %287  ;;  %v378_v47 = vmul.f32 0.00390625, %v336_v22  ;;  %v591_v2 = vsel %vm499_vm9, %v590_v3, %v586_v63  ;;  %v3772_v3 = vld [vmem:[#allocation12_spill] sm:$0xff]  ;;  %v3785_v63 = vld [vmem:[#allocation26_spill] sm:$0xff] }
  0xf5   : > { %v362_v55 = vmul.f32 0.00390625, %v288_v33 }
  0xf6   : > { %v595_v33 = vrot.slane %v378_v47, %v3304_v52 }
  0xf7   : > { %v339_v54 = vpop.xlane.xlu1 %338  ;;  %v505_v7 = vrot.slane %v362_v55, %v3304_v52  ;;  %v500_v52 = vsel %vm499_vm9, %v498_v59, %v493_v27  ;;  %v3776_v59 = vld [vmem:[#allocation15_spill] sm:$0xff]  ;;  %v3789_v27 = vld [vmem:[#allocation28_spill] sm:$0xff] }
  0xf8   : > { %v291_v57 = vpop.xlane.xlu0 %290  ;;  %v379_v60 = vmul.f32 0.00390625, %v339_v54 }
  0xf9   : > { %v363_v25 = vmul.f32 0.00390625, %v291_v57  ;;  %v507_v51 = vsel %vm506_vm10, %v505_v7, %v500_v52  ;;  %v3781_v7 = vld [vmem:[#allocation23_spill] sm:$0xff] }
  0xfa   : > { %v600_v57 = vrot.slane %v379_v60, %v3307_v42  ;;  %v3793_v52 = vld [vmem:[#allocation31_spill] sm:$0xff] }
  0xfb   : > { %v342_v8 = vpop.xlane.xlu1 %341  ;;  %v512_v11 = vrot.slane %v363_v25, %v3307_v42 }
  0xfc   : > { %v294_v61 = vpop.xlane.xlu0 %293  ;;  %v380_v53 = vmul.f32 0.00390625, %v342_v8 }
  0xfd   : > { %v364_v22 = vmul.f32 0.00390625, %v294_v61  ;;  %v596_v61 = vsel %vm506_vm10, %v595_v33, %v591_v2  ;;  %v3777_v33 = vld [vmem:[#allocation20_spill] sm:$0xff]  ;;  %v3790_v2 = vld [vmem:[#allocation27_spill] sm:$0xff] }
  0xfe   : > { %v605_v8 = vrot.slane %v380_v53, %v3310_v13  ;;  %v601_v26 = vsel %vm513_vm11, %v600_v57, %v596_v61  ;;  %v3758_v53 = vmov 0.0   ;;  %v3782_v57 = vld [vmem:[#allocation22_spill] sm:$0xff] }
  0xff   : > { %v345_v16 = vpop.xlane.xlu1 %344  ;;  %v519_v1 = vrot.slane %v364_v22, %v3310_v13  ;;  %v514_v13 = vsel %vm513_vm11, %v512_v11, %v507_v51  ;;  %v3773_v22 = vld [vmem:[#allocation17_spill] sm:$0xff]  ;;  %v3794_v61 = vld [vmem:[#allocation30_spill] sm:$0xff] }
 0x100   : > { %v297_v49 = vpop.xlane.xlu0 %296  ;;  %v381_v4 = vmul.f32 0.00390625, %v345_v16  ;;  %v606_v41 = vsel %vm520_vm12, %v605_v8, %v601_v26  ;;  %v3786_v11 = vld [vmem:[#allocation25_spill] sm:$0xff] }
 0x101   : > { %v365_v54 = vmul.f32 0.00390625, %v297_v49  ;;  %v521_v10 = vsel %vm520_vm12, %v519_v1, %v514_v13  ;;  %v3787_v8 = vpack.c.bf16 %v3785_v63, %v3786_v11  ;;  %v3791_v1 = vpack.c.bf16 %v3789_v27, %v3790_v2  ;;  %v2676_v63 = vld [vmem:[%s2969_s11 + $0x30] sm:$0xff]  ;;  %v2678_v27 = vld [vmem:[%s2969_s11 + $0x60] sm:$0xff] }
 0x102   : > { %v610_v24 = vrot.slane %v381_v4, %v3314_v40  ;;  %v3774_v4 = vld [vmem:[#allocation16_spill] sm:$0xff] }
 0x103   : > { %v348_v45 = vpop.xlane.xlu1 %347  ;;  %v526_v44 = vrot.slane %v365_v54, %v3314_v40  ;;  %v3775_v5 = vpack.c.bf16 %v3773_v22, %v3774_v4  ;;  %v3778_v54 = vld [vmem:[#allocation19_spill] sm:$0xff] }
 0x104   : > { %v382_v21 = vmul.f32 0.00390625, %v348_v45  ;;  %v300_v35 = vpop.xlane.xlu0 %299  ;;  %v611_v40 = vsel %vm527_vm13, %v610_v24, %v606_v41  ;;  %v3779_v45 = vpack.c.bf16 %v3777_v33, %v3778_v54  ;;  %v3792_v24 = vld [vmem:[#allocation29_spill] sm:$0xff] }
 0x105   : > { %v366_v32 = vmul.f32 0.00390625, %v300_v35  ;;  %v528_v47 = vsel %vm527_vm13, %v526_v44, %v521_v10  ;;  %v3784_v35 = vld [vmem:[#allocation21_spill] sm:$0xff]  ;;  %v3795_v44 = vpack.c.bf16 %v3793_v52, %v3794_v61 }
 0x106   : > { %v615_v20 = vrot.slane %v382_v21, %v3319_v56  ;;  %v3783_v21 = vpack.c.bf16 %v3781_v7, %v3782_v57  ;;  %v2673_v33 = vld [vmem:[%s2969_s11 + $0x28] sm:$0xff] }
 0x107   : > { %v351_v42 = vpop.xlane.xlu1 %350  ;;  %v533_v36 = vrot.slane %v366_v32, %v3319_v56  ;;  %v3788_v32 = vld [vmem:[#allocation24_spill] sm:$0xff]  ;;  %v2675_v7 = vld [vmem:[%s2969_s11 + $0x48] sm:$0xff] }
 0x108   : > { %v383_v18 = vmul.f32 0.00390625, %v351_v42  ;;  %v303_v19 = vpop.xlane.xlu0 %302  ;;  %v616_v16 = vsel %vm534_vm14, %v615_v20, %v611_v40  ;;  %v1267_v20 = vld [vmem:[%s3694_s2] sm:$0xff] }
 0x109   : > { %v367_v39 = vmul.f32 0.00390625, %v303_v19  ;;  %v535_v15 = vsel %vm534_vm14, %v533_v36, %v528_v47  ;;  %v1273_v42 = vand.u32 4294901760, %v1267_v20 }
 0x10a   : > { %v620_v29 = vrot.slane %v383_v18, %v3333_v46 }
 0x10b   : > { %v540_v56 = vrot.slane %v367_v39, %v3333_v46  ;;  %v3759_v46 = vmov 0.0|0.0   ;;  %v1350_v13 = vsub.f32 %v1267_v20, %v1273_v42 }
 0x10c   : > { %v621_v34 = vsel %vm541_vm15, %v620_v29, %v616_v16 }
 0x10d   : > { %v542_v55 = vsel %vm541_vm15, %v540_v56, %v535_v15  ;;  %v1351_v10 = vand.u32 4294901760, %v1350_v13 }
 0x10e   : > { %v623_v60 = vsel %vm622_vm1, %v621_v34, %v542_v55 }
 0x10f   : > { %v3389_v49 = vand.u32 4294901760, %v623_v60  ;;  %v1352_v47 = vsub.f32 %v1350_v13, %v1351_v10 }
 0x111   : > { %v3392_v9 = vsub.f32 %v623_v60, %v3389_v49  ;;  %v1353_v15 = vand.u32 4294901760, %v1352_v47  ;;  %v2686_v47 = vld [vmem:[%s2969_s11 + $0xa0] sm:$0xff] }
 0x113   : > { %v708_v23 = vand.u32 4294901760, %v3392_v9 }
 0x115   : > { %2347 = vmatmul.mubr.f32.vlgmr.msra.gmra.mrb[0].mxu0 %v708_v23  ;;  %v709_v25 = vsub.f32 %v3392_v9, %v708_v23 }
 0x116   : > { %2547 = vmatpush3.bf16.msra.mxu0 %v3172_v28  ;;  %2381 = vmatprep.mubr.msk.f32.mxu0 %vm2834_vm0, %v3758_v53  ;;  %v3760_v28 = vld [vmem:[#allocation32_spill] sm:$0xff] }
 0x117   : > { %2548 = vmatprep.subr.bf16.mxu0 %v3759_v46  ;;  %v710_v58 = vand.u32 4294901760, %v709_v25 }
 0x119   : > { %2242 = vmatmul.mubr.f32.vlgmr.msra.gmra.mrb[0].mxu1 %v710_v58 }
 0x11a   : > { %2475 = vmatpush3.bf16.msra.mxu1 %v3181_v37  ;;  %2550 = vmatpush3.bf16.msra.mxu0 %v3183_v38  ;;  %v3761_v37 = vld [vmem:[#allocation33_spill] sm:$0xff]  ;;  %v3762_v38 = vld [vmem:[#allocation34_spill] sm:$0xff] }
 0x11b   : > { %2476 = vmatprep.subr.bf16.mxu1 %v3759_v46  ;;  %2551 = vmatprep.subr.bf16.mxu0 %v3759_v46 }
 0x11c   : > { %2276 = vmatprep.mubr.msk.f32.mxu1 %vm2834_vm0, %v3758_v53 }
 0x11e   : > { %2478 = vmatpush3.bf16.msra.mxu1 %v3189_v48  ;;  %2553 = vmatpush3.bf16.msra.mxu0 %v3191_v50  ;;  %v3763_v48 = vld [vmem:[#allocation35_spill] sm:$0xff]  ;;  %v3764_v50 = vld [vmem:[#allocation8_spill] sm:$0xff] }
 0x11f   : > { %2479 = vmatprep.subr.bf16.mxu1 %v3759_v46  ;;  %2554 = vmatprep.subr.bf16.mxu0 %v3759_v46 }
 0x122   : > { %2481 = vmatpush3.bf16.msra.mxu1 %v3197_v62  ;;  %2556 = vmatpush3.bf16.msra.mxu0 %v3199_v0  ;;  %v3765_v62 = vld [vmem:[#allocation11_spill] sm:$0xff]  ;;  %v3766_v0 = vld [vmem:[#allocation10_spill] sm:$0xff] }
 0x123   : > { %2482 = vmatprep.subr.bf16.mxu1 %v3759_v46  ;;  %2557 = vmatprep.subr.bf16.mxu0 %v3759_v46 }
 0x126   : > { %2484 = vmatpush3.bf16.msra.mxu1 %v3205_v12  ;;  %2559 = vmatpush3.bf16.msra.mxu0 %v3207_v14  ;;  %v3767_v12 = vpack.c.bf16 %v3765_v62, %v3766_v0  ;;  %v3768_v14 = vld [vmem:[#allocation9_spill] sm:$0xff]  ;;  %v2668_v62 = vld [vmem:[%s2969_s11 + $0x10] sm:$0xff] }
 0x127   : > { %2485 = vmatprep.subr.bf16.mxu1 %v3759_v46  ;;  %2560 = vmatprep.subr.bf16.mxu0 %v3759_v46 }
 0x12a   : > { %2487 = vmatpush3.bf16.msra.mxu1 %v3213_v30  ;;  %2562 = vmatpush3.bf16.msra.mxu0 %v3215_v31  ;;  %v3769_v30 = vld [vmem:[#allocation14_spill] sm:$0xff]  ;;  %v3770_v31 = vld [vmem:[#allocation13_spill] sm:$0xff] }
 0x12b   : > { %2488 = vmatprep.subr.bf16.mxu1 %v3759_v46  ;;  %2563 = vmatprep.subr.bf16.mxu0 %v3759_v46 }
 0x12e   : > { %2490 = vmatpush3.bf16.msra.mxu1 %v3221_v43  ;;  %2565 = vmatpush3.bf16.msra.mxu0 %v3760_v28  ;;  %v3771_v43 = vpack.c.bf16 %v3769_v30, %v3770_v31  ;;  %v1726_v28 = vsub.s32 0, %v3265_v17  ;;  %v2670_v30 = vld [vmem:[%s2969_s11] sm:$0xff] }
 0x12f   : > { %2491 = vmatprep.subr.bf16.mxu1 %v3759_v46  ;;  %2566 = vmatprep.subr.bf16.mxu0 %v3759_v46 }
 0x132   : > { %2493 = vmatpush3.bf16.msra.mxu1 %v3761_v37  ;;  %2568 = vmatpush3.bf16.msra.mxu0 %v3762_v38 }
 0x133   : > { %2494 = vmatprep.subr.bf16.mxu1 %v3759_v46  ;;  %2569 = vmatprep.subr.bf16.mxu0 %v3759_v46 }
 0x135   : > { %2382 = vmatmul.mubr.f32.vlgmr.msra.gmra.mrb[0].mxu0 %v3389_v49 }
 0x136   : > { %2496 = vmatpush3.bf16.msra.mxu1 %v3763_v48  ;;  %2571 = vmatpush3.bf16.msra.mxu0 %v3764_v50 }
 0x137   : > { %2497 = vmatprep.subr.bf16.mxu1 %v3759_v46  ;;  %2572 = vmatprep.subr.bf16.mxu0 %v3759_v46 }
 0x138   : > { %2416 = vmatprep.mubr.msk.f32.mxu0 %vm2834_vm0, %v3758_v53 }
 0x139   : > { %2277 = vmatmul.mubr.f32.vlgmr.msra.gmra.mrb[0].mxu1 %v3389_v49 }
 0x13a   : > { %2499 = vmatpush3.bf16.msra.mxu1 %v3767_v12  ;;  %2574 = vmatpush3.bf16.msra.mxu0 %v3768_v14  ;;  %v2669_v12 = vld [vmem:[%s2969_s11 + $0x18] sm:$0xff] }
 0x13b   : > { %2500 = vmatprep.subr.bf16.mxu1 %v3759_v46  ;;  %2575 = vmatprep.subr.bf16.mxu0 %v3759_v46 }
 0x13c   : > { %2311 = vmatprep.mubr.msk.f32.mxu1 %vm2834_vm0, %v3758_v53 }
 0x13e   : > { %2502 = vmatpush3.bf16.msra.mxu1 %v3771_v43  ;;  %2577 = vmatpush3.bf16.msra.mxu0 %v3772_v3  ;;  %v2671_v43 = vld [vmem:[%s2969_s11 + $0x8] sm:$0xff] }
 0x13f   : > { %2503 = vmatprep.subr.bf16.mxu1 %v3759_v46  ;;  %2578 = vmatprep.subr.bf16.mxu0 %v3759_v46 }
 0x142   : > { %2505 = vmatpush3.bf16.msra.mxu1 %v3775_v5  ;;  %2580 = vmatpush3.bf16.msra.mxu0 %v3776_v59  ;;  %v2672_v5 = vld [vmem:[%s2969_s11 + $0x20] sm:$0xff] }
 0x143   : > { %2506 = vmatprep.subr.bf16.mxu1 %v3759_v46  ;;  %2581 = vmatprep.subr.bf16.mxu0 %v3759_v46 }
 0x146   : > { %2508 = vmatpush3.bf16.msra.mxu1 %v3779_v45  ;;  %2583 = vmatpush3.bf16.msra.mxu0 %v3780_v6  ;;  %v2674_v45 = vld [vmem:[%s2969_s11 + $0x40] sm:$0xff] }
 0x147   : > { %2509 = vmatprep.subr.bf16.mxu1 %v3759_v46  ;;  %2584 = vmatprep.subr.bf16.mxu0 %v3759_v46 }
 0x14a   : > { %2511 = vmatpush3.bf16.msra.mxu1 %v3783_v21  ;;  %2586 = vmatpush3.bf16.msra.mxu0 %v3784_v35 }
 0x14b   : > { %2512 = vmatprep.subr.bf16.mxu1 %v3759_v46  ;;  %2587 = vmatprep.subr.bf16.mxu0 %v3759_v46 }
 0x14e   : > { %2514 = vmatpush3.bf16.msra.mxu1 %v3787_v8  ;;  %2589 = vmatpush3.bf16.msra.mxu0 %v3788_v32  ;;  %v2677_v8 = vld [vmem:[%s2969_s11 + $0x38] sm:$0xff] }
 0x14f   : > { %2515 = vmatprep.subr.bf16.mxu1 %v3759_v46  ;;  %2590 = vmatprep.subr.bf16.mxu0 %v3759_v46 }
 0x152   : > { %2517 = vmatpush3.bf16.msra.mxu1 %v3791_v1  ;;  %2592 = vmatpush3.bf16.msra.mxu0 %v3792_v24  ;;  %v2679_v1 = vld [vmem:[%s2969_s11 + $0x68] sm:$0xff] }
 0x153   : > { %2518 = vmatprep.subr.bf16.mxu1 %v3759_v46  ;;  %2419 = vmatprep.subr.mxu0 %v3758_v53 }
 0x155   : > { %2417 = vmatmul.mubr.f32.vlgmr.msra.gmra.mrb[0].mxu0 %v3389_v49 }
 0x156   : > { %2520 = vmatpush3.bf16.msra.mxu1 %v3795_v44  ;;  %2421 = vmatprep.mubr.msk.f32.mxu0 %vm2834_vm0, %v3758_v53  ;;  %v2680_v44 = vld [vmem:[%s2969_s11 + $0x50] sm:$0xff] }
 0x157   : > { %2434 = vmatprep.subr.mxu1 %v3758_v53  ;;  %2420 = vmatpush3.msra.mxu0 %v1273_v42 }
 0x158   : > { %2424 = vmatprep.subr.mxu0 %v3758_v53 }
 0x159   : > { %2312 = vmatmul.mubr.f32.vlgmr.msra.gmra.mrb[0].mxu1 %v3392_v9 }
 0x15a   : > { %2436 = vmatprep.mubr.msk.f32.mxu1 %vm2834_vm0, %v3758_v53  ;;  %2435 = vmatpush3.msra.mxu1 %v1273_v42 }
 0x15b   : > { %2439 = vmatprep.subr.mxu1 %v3758_v53 }
 0x228   : > { %v1262_v51 = vpop.f32.mrb[0].mxu0 }
 0x229   : > { %v2418_v26 = vpop.f32.mrb[1].mxu0 }
 0x22a   : > { %v2682_v26 = vld [vmem:[%s2969_s11 + $0x80] sm:$0xff] }
 0x22c   : > { %v967_v36 = vpop.f32.mrb[0].mxu1 }
 0x22d   : > { %v2593_v18 = vadd.f32 %v1262_v51, %v967_v36  ;;  %v2313_v19 = vpop.f32.mrb[1].mxu1 }
 0x22f   : > { %v1266_v41 = vmax.f32 %v2593_v18, 0.0  ;;  %v2683_v18 = vld [vmem:[%s2969_s11 + $0x88] sm:$0xff] }
 0x231   : > { %v1270_v39 = vsel %vm1268_vm2, %v1266_v41, 0 }
 0x232   : > { %v1338_v40 = vand.u32 4294901760, %v1270_v39 }
 0x234   : > { %v1339_v29 = vsub.f32 %v1270_v39, %v1338_v40  ;;  %v2684_v39 = vld [vmem:[%s2969_s11 + $0x70] sm:$0xff] }
 0x236   : > { %v1340_v16 = vand.u32 4294901760, %v1339_v29 }
 0x238   : > { %2437 = vmatmul.mubr.f32.vlgmr.msra.gmra.mrb[2].mxu1 %v1340_v16  ;;  %v1341_v56 = vsub.f32 %v1339_v29, %v1340_v16 }
 0x239   : > { %2440 = vmatpush3.msra.mxu1 %v1351_v10  ;;  %2441 = vmatprep.mubr.msk.f32.mxu1 %vm2834_vm0, %v3758_v53 }
 0x23a   : > { %v1342_v34 = vand.u32 4294901760, %v1341_v56  ;;  %2444 = vmatprep.subr.mxu1 %v3758_v53  ;;  %v2687_v56 = vld [vmem:[%s2969_s11 + $0xa8] sm:$0xff] }
 0x23c   : > { %2422 = vmatmul.mubr.f32.vlgmr.msra.gmra.mrb[2].mxu0 %v1342_v34 }
 0x23d   : > { %2425 = vmatpush3.msra.mxu0 %v1353_v15  ;;  %2426 = vmatprep.mubr.msk.f32.mxu0 %vm2834_vm0, %v3758_v53 }
 0x23e   : > { %2429 = vmatprep.subr.mxu0 %v3758_v53 }
 0x240   : > { %2442 = vmatmul.mubr.f32.vlgmr.msra.gmra.mrb[2].mxu1 %v1338_v40 }
 0x241   : > { %2445 = vmatpush3.msra.mxu1 %v1273_v42  ;;  %2446 = vmatprep.mubr.msk.f32.mxu1 %vm2834_vm0, %v3758_v53  ;;  %v2681_v42 = vld [vmem:[%s2969_s11 + $0x58] sm:$0xff] }
 0x244   : > { %2427 = vmatmul.mubr.f32.vlgmr.msra.gmra.mrb[2].mxu0 %v1338_v40 }
 0x245   : > { %2430 = vmatpush3.msra.mxu0 %v1350_v13  ;;  %2431 = vmatprep.mubr.msk.f32.mxu0 %vm2834_vm0, %v3758_v53  ;;  %v1793_v53 = vsub.s32 1, %v3265_v17 }
 0x248   : > { %2447 = vmatmul.mubr.f32.vlgmr.msra.gmra.mrb[2].mxu1 %v1338_v40  ;;  %v2685_v40 = vld [vmem:[%s2969_s11 + $0x78] sm:$0xff] }
 0x24c   : > { %2432 = vmatmul.mubr.f32.vlgmr.msra.gmra.mrb[2].mxu0 %v1339_v29 }
 0x31b   : > { %v1714_v55 = vpop.f32.mrb[2].mxu1 }
 0x31c   : > { %v2448_v60 = vpop.f32.mrb[3].mxu1 }
 0x31d   : > { %v2688_v60 = vld [vmem:[%s2969_s11 + $0x90] sm:$0xff] }
 0x31f   : > { %v1494_v49 = vpop.f32.mrb[2].mxu0 }
 0x320   : > { %v2594_v9 = vadd.f32 %v1714_v55, %v1494_v49  ;;  %v2433_v23 = vpop.f32.mrb[3].mxu0 }
 0x322   : > { %v2084_v25 = vmul.f32 -1.442695, %v2594_v9  ;;  %v2689_v9 = vld [vmem:[%s2969_s11 + $0x98] sm:$0xff] }
 0x324   : > { %2664 = vpow2.f32 %v2084_v25  ;;  %v2690_v25 = vld [vmem:[%s2969_s11 + $0xc0] sm:$0xff] }
 0x32e   : > { %v2665_v46 = vpop.eup %2664 }
 0x32f   : > { %v1721_v58 = vadd.f32 1.0, %v2665_v46 }
 0x331   : > { %2666 = vrcp.f32 %v1721_v58  ;;  %v2691_v58 = vld [vmem:[%s2969_s11 + $0xc8] sm:$0xff] }
 0x33b   : > { %v2667_v37 = vpop.eup %2666 }
 0x33c   : > { %v1727_v38 = vrot.slane %v2667_v37, %v1726_v28  ;;  %v1794_v48 = vrot.slane %v2667_v37, %v1793_v53  ;;  %v2692_v53 = vld [vmem:[%s2969_s11 + $0xb0] sm:$0xff] }
 0x33e   : > { %1733 = vbcast.lane.b32.xlu1 %v1727_v38, 264  ;;  %1729 = vbcast.lane.b32.xlu0 %v1727_v38, 256 }
 0x342   : > { %1737 = vbcast.lane.b32.xlu1 %v1727_v38, 272  ;;  %1745 = vbcast.lane.b32.xlu0 %v1727_v38, 288 }
 0x346   : > { %1741 = vbcast.lane.b32.xlu1 %v1727_v38, 280  ;;  %1753 = vbcast.lane.b32.xlu0 %v1727_v38, 304 }
 0x34a   : > { %1749 = vbcast.lane.b32.xlu1 %v1727_v38, 296  ;;  %1761 = vbcast.lane.b32.xlu0 %v1727_v38, 320 }
 0x34e   : > { %1757 = vbcast.lane.b32.xlu1 %v1727_v38, 312  ;;  %1769 = vbcast.lane.b32.xlu0 %v1727_v38, 336 }
 0x352   : > { %1765 = vbcast.lane.b32.xlu1 %v1727_v38, 328  ;;  %1777 = vbcast.lane.b32.xlu0 %v1727_v38, 352 }
 0x356   : > { %1773 = vbcast.lane.b32.xlu1 %v1727_v38, 344  ;;  %1785 = vbcast.lane.b32.xlu0 %v1727_v38, 368 }
 0x35a   : > { %1781 = vbcast.lane.b32.xlu1 %v1727_v38, 360  ;;  %1796 = vbcast.lane.b32.xlu0 %v1794_v48, 256 }
 0x35e   : > { %1789 = vbcast.lane.b32.xlu1 %v1727_v38, 376  ;;  %1804 = vbcast.lane.b32.xlu0 %v1794_v48, 272 }
 0x362   : > { %1800 = vbcast.lane.b32.xlu1 %v1794_v48, 264  ;;  %1812 = vbcast.lane.b32.xlu0 %v1794_v48, 288 }
 0x366   : > { %1808 = vbcast.lane.b32.xlu1 %v1794_v48, 280  ;;  %1820 = vbcast.lane.b32.xlu0 %v1794_v48, 304 }
 0x36a   : > { %1816 = vbcast.lane.b32.xlu1 %v1794_v48, 296  ;;  %1828 = vbcast.lane.b32.xlu0 %v1794_v48, 320 }
 0x36e   : > { %1824 = vbcast.lane.b32.xlu1 %v1794_v48, 312  ;;  %1836 = vbcast.lane.b32.xlu0 %v1794_v48, 336 }
 0x372   : > { %1832 = vbcast.lane.b32.xlu1 %v1794_v48, 328  ;;  %1844 = vbcast.lane.b32.xlu0 %v1794_v48, 352 }
 0x376   : > { %1840 = vbcast.lane.b32.xlu1 %v1794_v48, 344  ;;  %1852 = vbcast.lane.b32.xlu0 %v1794_v48, 368 }
 0x37a   : > { %1848 = vbcast.lane.b32.xlu1 %v1794_v48, 360 }
 0x37e   : > { %1856 = vbcast.lane.b32.xlu1 %v1794_v48, 376 }
 0x3b0   : > { %v1734_v17 = vpop.permute.xlu1 %1733  ;;  %v1730_v50 = vpop.permute.xlu0 %1729 }
 0x3b1   : > { %v1860_v0 = vmul.f32 %v2668_v62, %v1734_v17  ;;  %v1861_v14 = vmul.f32 %v2669_v12, %v1734_v17  ;;  %v1858_v31 = vmul.f32 %v2670_v30, %v1730_v50  ;;  %v1859_v3 = vmul.f32 %v2671_v43, %v1730_v50  ;;  %v2693_v17 = vld [vmem:[%s2969_s11 + $0xb8] sm:$0xff]  ;;  %v2694_v62 = vld [vmem:[%s2969_s11 + $0xe0] sm:$0xff]  ;;  %v2695_v12 = vld [vmem:[%s2969_s11 + $0xe8] sm:$0xff] }
 0x3b2   : > { %v2696_v43 = vld [vmem:[%s2969_s11 + $0xd0] sm:$0xff] }
 0x3b3   : > { %1924 = vst [vmem:[%s3515_s8 + $0x10] sm:$0xff] %v1860_v0  ;;  %1925 = vst [vmem:[%s3515_s8 + $0x18] sm:$0xff] %v1861_v14 }
 0x3b4   : > { %1922 = vst [vmem:[%s3515_s8] sm:$0xff] %v1858_v31  ;;  %1923 = vst [vmem:[%s3515_s8 + $0x8] sm:$0xff] %v1859_v3  ;;  %v1738_v22 = vpop.permute.xlu1 %1737  ;;  %v1746_v4 = vpop.permute.xlu0 %1745 }
 0x3b5   : > { %v1862_v59 = vmul.f32 %v2672_v5, %v1738_v22  ;;  %v1863_v54 = vmul.f32 %v2673_v33, %v1738_v22  ;;  %v1866_v6 = vmul.f32 %v2674_v45, %v1746_v4  ;;  %v1867_v57 = vmul.f32 %v2675_v7, %v1746_v4  ;;  %v2697_v22 = vld [vmem:[%s2969_s11 + $0xd8] sm:$0xff]  ;;  %v2698_v5 = vld [vmem:[%s2969_s11 + $0x100] sm:$0xff]  ;;  %v2699_v33 = vld [vmem:[%s2969_s11 + $0x108] sm:$0xff] }
 0x3b6   : > { %v2700_v7 = vld [vmem:[%s2969_s11 + $0xf0] sm:$0xff] }
 0x3b7   : > { %1926 = vst [vmem:[%s3515_s8 + $0x20] sm:$0xff] %v1862_v59  ;;  %1927 = vst [vmem:[%s3515_s8 + $0x28] sm:$0xff] %v1863_v54 }
 0x3b8   : > { %1930 = vst [vmem:[%s3515_s8 + $0x40] sm:$0xff] %v1866_v6  ;;  %1931 = vst [vmem:[%s3515_s8 + $0x48] sm:$0xff] %v1867_v57  ;;  %v1742_v21 = vpop.permute.xlu1 %1741  ;;  %v1754_v35 = vpop.permute.xlu0 %1753 }
 0x3b9   : > { %v1864_v11 = vmul.f32 %v2676_v63, %v1742_v21  ;;  %v1865_v32 = vmul.f32 %v2677_v8, %v1742_v21  ;;  %v1870_v2 = vmul.f32 %v2678_v27, %v1754_v35  ;;  %v1871_v24 = vmul.f32 %v2679_v1, %v1754_v35  ;;  %v2701_v21 = vld [vmem:[%s2969_s11 + $0xf8] sm:$0xff]  ;;  %v2702_v63 = vld [vmem:[%s2969_s11 + $0x120] sm:$0xff]  ;;  %v2703_v8 = vld [vmem:[%s2969_s11 + $0x128] sm:$0xff] }
 0x3ba   : > { %v2704_v1 = vld [vmem:[%s2969_s11 + $0x110] sm:$0xff] }
 0x3bb   : > { %1928 = vst [vmem:[%s3515_s8 + $0x30] sm:$0xff] %v1864_v11  ;;  %1929 = vst [vmem:[%s3515_s8 + $0x38] sm:$0xff] %v1865_v32 }
 0x3bc   : > { %1934 = vst [vmem:[%s3515_s8 + $0x60] sm:$0xff] %v1870_v2  ;;  %1935 = vst [vmem:[%s3515_s8 + $0x68] sm:$0xff] %v1871_v24  ;;  %v1750_v52 = vpop.permute.xlu1 %1749  ;;  %v1762_v61 = vpop.permute.xlu0 %1761 }
 0x3bd   : > { %v1868_v20 = vmul.f32 %v2680_v44, %v1750_v52  ;;  %v1869_v51 = vmul.f32 %v2681_v42, %v1750_v52  ;;  %v1874_v36 = vmul.f32 %v2682_v26, %v1762_v61  ;;  %v1875_v19 = vmul.f32 %v2683_v18, %v1762_v61  ;;  %v2705_v52 = vld [vmem:[%s2969_s11 + $0x118] sm:$0xff]  ;;  %v2706_v44 = vld [vmem:[%s2969_s11 + $0x140] sm:$0xff]  ;;  %v2707_v42 = vld [vmem:[%s2969_s11 + $0x148] sm:$0xff] }
 0x3be   : > { %v2708_v18 = vld [vmem:[%s2969_s11 + $0x130] sm:$0xff] }
 0x3bf   : > { %1932 = vst [vmem:[%s3515_s8 + $0x50] sm:$0xff] %v1868_v20  ;;  %1933 = vst [vmem:[%s3515_s8 + $0x58] sm:$0xff] %v1869_v51 }
 0x3c0   : > { %1938 = vst [vmem:[%s3515_s8 + $0x80] sm:$0xff] %v1874_v36  ;;  %1939 = vst [vmem:[%s3515_s8 + $0x88] sm:$0xff] %v1875_v19  ;;  %v1758_v13 = vpop.permute.xlu1 %1757  ;;  %v1770_v41 = vpop.permute.xlu0 %1769 }
 0x3c1   : > { %v1872_v10 = vmul.f32 %v2684_v39, %v1758_v13  ;;  %v1873_v29 = vmul.f32 %v2685_v40, %v1758_v13  ;;  %v1878_v16 = vmul.f32 %v2686_v47, %v1770_v41  ;;  %v1879_v15 = vmul.f32 %v2687_v56, %v1770_v41  ;;  %v2709_v13 = vld [vmem:[%s2969_s11 + $0x138] sm:$0xff]  ;;  %v2710_v39 = vld [vmem:[%s2969_s11 + $0x160] sm:$0xff]  ;;  %v2711_v40 = vld [vmem:[%s2969_s11 + $0x168] sm:$0xff] }
 0x3c2   : > { %v2712_v56 = vld [vmem:[%s2969_s11 + $0x150] sm:$0xff] }
 0x3c3   : > { %1936 = vst [vmem:[%s3515_s8 + $0x70] sm:$0xff] %v1872_v10  ;;  %1937 = vst [vmem:[%s3515_s8 + $0x78] sm:$0xff] %v1873_v29 }
 0x3c4   : > { %1942 = vst [vmem:[%s3515_s8 + $0xa0] sm:$0xff] %v1878_v16  ;;  %1943 = vst [vmem:[%s3515_s8 + $0xa8] sm:$0xff] %v1879_v15  ;;  %v1766_v34 = vpop.permute.xlu1 %1765  ;;  %v1778_v55 = vpop.permute.xlu0 %1777 }
 0x3c5   : > { %v1876_v49 = vmul.f32 %v2688_v60, %v1766_v34  ;;  %v1877_v23 = vmul.f32 %v2689_v9, %v1766_v34  ;;  %v1882_v46 = vmul.f32 %v2690_v25, %v1778_v55  ;;  %v1883_v28 = vmul.f32 %v2691_v58, %v1778_v55  ;;  %v2713_v34 = vld [vmem:[%s2969_s11 + $0x158] sm:$0xff]  ;;  %v2714_v60 = vld [vmem:[%s2969_s11 + $0x180] sm:$0xff]  ;;  %v2715_v9 = vld [vmem:[%s2969_s11 + $0x188] sm:$0xff] }
 0x3c6   : > { %v2716_v58 = vld [vmem:[%s2969_s11 + $0x170] sm:$0xff] }
 0x3c7   : > { %1940 = vst [vmem:[%s3515_s8 + $0x90] sm:$0xff] %v1876_v49  ;;  %1941 = vst [vmem:[%s3515_s8 + $0x98] sm:$0xff] %v1877_v23 }
 0x3c8   : > { %1946 = vst [vmem:[%s3515_s8 + $0xc0] sm:$0xff] %v1882_v46  ;;  %1947 = vst [vmem:[%s3515_s8 + $0xc8] sm:$0xff] %v1883_v28  ;;  %v1774_v37 = vpop.permute.xlu1 %1773  ;;  %v1786_v38 = vpop.permute.xlu0 %1785 }
 0x3c9   : > { %v1880_v48 = vmul.f32 %v2692_v53, %v1774_v37  ;;  %v1881_v50 = vmul.f32 %v2693_v17, %v1774_v37  ;;  %v1886_v0 = vmul.f32 %v2694_v62, %v1786_v38  ;;  %v1887_v14 = vmul.f32 %v2695_v12, %v1786_v38  ;;  %v2717_v37 = vld [vmem:[%s2969_s11 + $0x178] sm:$0xff]  ;;  %v2718_v53 = vld [vmem:[%s2969_s11 + $0x1a0] sm:$0xff]  ;;  %v2719_v17 = vld [vmem:[%s2969_s11 + $0x1a8] sm:$0xff] }
 0x3ca   : > { %v2720_v12 = vld [vmem:[%s2969_s11 + $0x190] sm:$0xff] }
 0x3cb   : > { %1944 = vst [vmem:[%s3515_s8 + $0xb0] sm:$0xff] %v1880_v48  ;;  %1945 = vst [vmem:[%s3515_s8 + $0xb8] sm:$0xff] %v1881_v50 }
 0x3cc   : > { %1950 = vst [vmem:[%s3515_s8 + $0xe0] sm:$0xff] %v1886_v0  ;;  %1951 = vst [vmem:[%s3515_s8 + $0xe8] sm:$0xff] %v1887_v14  ;;  %v1782_v30 = vpop.permute.xlu1 %1781  ;;  %v1797_v31 = vpop.permute.xlu0 %1796 }
 0x3cd   : > { %v1884_v3 = vmul.f32 %v2696_v43, %v1782_v30  ;;  %v1885_v4 = vmul.f32 %v2697_v22, %v1782_v30  ;;  %v1890_v59 = vmul.f32 %v2698_v5, %v1797_v31  ;;  %v1891_v54 = vmul.f32 %v2699_v33, %v1797_v31  ;;  %v2721_v30 = vld [vmem:[%s2969_s11 + $0x198] sm:$0xff]  ;;  %v2722_v43 = vld [vmem:[%s2969_s11 + $0x1c0] sm:$0xff]  ;;  %v2723_v22 = vld [vmem:[%s2969_s11 + $0x1c8] sm:$0xff] }
 0x3ce   : > { %v2724_v33 = vld [vmem:[%s2969_s11 + $0x1b0] sm:$0xff] }
 0x3cf   : > { %1948 = vst [vmem:[%s3515_s8 + $0xd0] sm:$0xff] %v1884_v3  ;;  %1949 = vst [vmem:[%s3515_s8 + $0xd8] sm:$0xff] %v1885_v4 }
 0x3d0   : > { %1954 = vst [vmem:[%s3515_s8 + $0x100] sm:$0xff] %v1890_v59  ;;  %1955 = vst [vmem:[%s3515_s8 + $0x108] sm:$0xff] %v1891_v54  ;;  %v1790_v45 = vpop.permute.xlu1 %1789  ;;  %v1805_v6 = vpop.permute.xlu0 %1804 }
 0x3d1   : > { %v1888_v57 = vmul.f32 %v2700_v7, %v1790_v45  ;;  %v1889_v35 = vmul.f32 %v2701_v21, %v1790_v45  ;;  %v1894_v11 = vmul.f32 %v2702_v63, %v1805_v6  ;;  %v1895_v32 = vmul.f32 %v2703_v8, %v1805_v6  ;;  %v2725_v45 = vld [vmem:[%s2969_s11 + $0x1b8] sm:$0xff]  ;;  %v2726_v7 = vld [vmem:[%s2969_s11 + $0x1e0] sm:$0xff]  ;;  %v2727_v21 = vld [vmem:[%s2969_s11 + $0x1e8] sm:$0xff] }
 0x3d3   : > { %1952 = vst [vmem:[%s3515_s8 + $0xf0] sm:$0xff] %v1888_v57  ;;  %1953 = vst [vmem:[%s3515_s8 + $0xf8] sm:$0xff] %v1889_v35 }
 0x3d4   : > { %1958 = vst [vmem:[%s3515_s8 + $0x120] sm:$0xff] %v1894_v11  ;;  %1959 = vst [vmem:[%s3515_s8 + $0x128] sm:$0xff] %v1895_v32  ;;  %v1801_v27 = vpop.permute.xlu1 %1800  ;;  %v1813_v2 = vpop.permute.xlu0 %1812  ;;  %v2728_v11 = vld [vmem:[%s2969_s11 + $0x1d0] sm:$0xff]  ;;  %v2729_v32 = vld [vmem:[%s2969_s11 + $0x1d8] sm:$0xff] }
 0x3d5   : > { %v1892_v24 = vmul.f32 %v2704_v1, %v1801_v27  ;;  %v1893_v61 = vmul.f32 %v2705_v52, %v1801_v27  ;;  %v1898_v20 = vmul.f32 %v2706_v44, %v1813_v2  ;;  %v1899_v51 = vmul.f32 %v2707_v42, %v1813_v2  ;;  %v2730_v1 = vld [vmem:[%s2969_s11 + $0x1f0] sm:$0xff]  ;;  %v2731_v52 = vld [vmem:[%s2969_s11 + $0x1f8] sm:$0xff] }
 0x3d7   : > { %1956 = vst [vmem:[%s3515_s8 + $0x110] sm:$0xff] %v1892_v24  ;;  %1957 = vst [vmem:[%s3515_s8 + $0x118] sm:$0xff] %v1893_v61 }
 0x3d8   : > { %1962 = vst [vmem:[%s3515_s8 + $0x140] sm:$0xff] %v1898_v20  ;;  %1963 = vst [vmem:[%s3515_s8 + $0x148] sm:$0xff] %v1899_v51  ;;  %v1809_v26 = vpop.permute.xlu1 %1808  ;;  %v1821_v36 = vpop.permute.xlu0 %1820 }
 0x3d9   : > { %v1896_v19 = vmul.f32 %v2708_v18, %v1809_v26  ;;  %v1897_v41 = vmul.f32 %v2709_v13, %v1809_v26  ;;  %v1902_v10 = vmul.f32 %v2710_v39, %v1821_v36  ;;  %v1903_v29 = vmul.f32 %v2711_v40, %v1821_v36 }
 0x3db   : > { %1960 = vst [vmem:[%s3515_s8 + $0x130] sm:$0xff] %v1896_v19  ;;  %1961 = vst [vmem:[%s3515_s8 + $0x138] sm:$0xff] %v1897_v41 }
 0x3dc   : > { %1966 = vst [vmem:[%s3515_s8 + $0x160] sm:$0xff] %v1902_v10  ;;  %1967 = vst [vmem:[%s3515_s8 + $0x168] sm:$0xff] %v1903_v29  ;;  %v1817_v47 = vpop.permute.xlu1 %1816  ;;  %v1829_v16 = vpop.permute.xlu0 %1828 }
 0x3dd   : > { %v1900_v15 = vmul.f32 %v2712_v56, %v1817_v47  ;;  %v1901_v55 = vmul.f32 %v2713_v34, %v1817_v47  ;;  %v1906_v49 = vmul.f32 %v2714_v60, %v1829_v16  ;;  %v1907_v23 = vmul.f32 %v2715_v9, %v1829_v16 }
 0x3df   : > { %1964 = vst [vmem:[%s3515_s8 + $0x150] sm:$0xff] %v1900_v15  ;;  %1965 = vst [vmem:[%s3515_s8 + $0x158] sm:$0xff] %v1901_v55 }
 0x3e0   : > { %1970 = vst [vmem:[%s3515_s8 + $0x180] sm:$0xff] %v1906_v49  ;;  %1971 = vst [vmem:[%s3515_s8 + $0x188] sm:$0xff] %v1907_v23  ;;  %v1825_v25 = vpop.permute.xlu1 %1824  ;;  %v1837_v46 = vpop.permute.xlu0 %1836 }
 0x3e1   : > { %v1904_v28 = vmul.f32 %v2716_v58, %v1825_v25  ;;  %v1905_v38 = vmul.f32 %v2717_v37, %v1825_v25  ;;  %v1910_v48 = vmul.f32 %v2718_v53, %v1837_v46  ;;  %v1911_v50 = vmul.f32 %v2719_v17, %v1837_v46 }
 0x3e3   : > { %1968 = vst [vmem:[%s3515_s8 + $0x170] sm:$0xff] %v1904_v28  ;;  %1969 = vst [vmem:[%s3515_s8 + $0x178] sm:$0xff] %v1905_v38 }
 0x3e4   : > { %1974 = vst [vmem:[%s3515_s8 + $0x1a0] sm:$0xff] %v1910_v48  ;;  %1975 = vst [vmem:[%s3515_s8 + $0x1a8] sm:$0xff] %v1911_v50  ;;  %v1833_v62 = vpop.permute.xlu1 %1832  ;;  %v1845_v0 = vpop.permute.xlu0 %1844 }
 0x3e5   : > { %v1908_v14 = vmul.f32 %v2720_v12, %v1833_v62  ;;  %v1909_v31 = vmul.f32 %v2721_v30, %v1833_v62  ;;  %v1914_v3 = vmul.f32 %v2722_v43, %v1845_v0  ;;  %v1915_v4 = vmul.f32 %v2723_v22, %v1845_v0 }
 0x3e7   : > { %1972 = vst [vmem:[%s3515_s8 + $0x190] sm:$0xff] %v1908_v14  ;;  %1973 = vst [vmem:[%s3515_s8 + $0x198] sm:$0xff] %v1909_v31 }
 0x3e8   : > { %1978 = vst [vmem:[%s3515_s8 + $0x1c0] sm:$0xff] %v1914_v3  ;;  %1979 = vst [vmem:[%s3515_s8 + $0x1c8] sm:$0xff] %v1915_v4  ;;  %v1841_v5 = vpop.permute.xlu1 %1840  ;;  %v1853_v59 = vpop.permute.xlu0 %1852 }
 0x3e9   : > { %v1912_v54 = vmul.f32 %v2724_v33, %v1841_v5  ;;  %v1913_v6 = vmul.f32 %v2725_v45, %v1841_v5  ;;  %v1918_v57 = vmul.f32 %v2726_v7, %v1853_v59  ;;  %v1919_v35 = vmul.f32 %v2727_v21, %v1853_v59 }
 0x3eb   : > { %1976 = vst [vmem:[%s3515_s8 + $0x1b0] sm:$0xff] %v1912_v54  ;;  %1977 = vst [vmem:[%s3515_s8 + $0x1b8] sm:$0xff] %v1913_v6 }
 0x3ec   : > { %1982 = vst [vmem:[%s3515_s8 + $0x1e0] sm:$0xff] %v1918_v57  ;;  %1983 = vst [vmem:[%s3515_s8 + $0x1e8] sm:$0xff] %v1919_v35  ;;  %v1849_v63 = vpop.permute.xlu1 %1848 }
 0x3ed   : > { %v1916_v8 = vmul.f32 %v2728_v11, %v1849_v63  ;;  %v1917_v27 = vmul.f32 %v2729_v32, %v1849_v63 }
 0x3ef   : > { %1980 = vst [vmem:[%s3515_s8 + $0x1d0] sm:$0xff] %v1916_v8  ;;  %1981 = vst [vmem:[%s3515_s8 + $0x1d8] sm:$0xff] %v1917_v27 }
 0x3f0   : > { %v1857_v2 = vpop.permute.xlu1 %1856 }
 0x3f1   : > { %v1920_v24 = vmul.f32 %v2730_v1, %v1857_v2  ;;  %v1921_v61 = vmul.f32 %v2731_v52, %v1857_v2 }
 0x3f3   : > { %1984 = vst [vmem:[%s3515_s8 + $0x1f0] sm:$0xff] %v1920_v24  ;;  %1985 = vst [vmem:[%s3515_s8 + $0x1f8] sm:$0xff] %v1921_v61 }
 0x3f4   : > { %2775 = shalt.err (!%p2772_p2)
}
 0x3f5   : > { %s2776_s11 = scalar_lea.hbm %s3642_s22, 8192  ;;  %s2780_s23 = scalar_lea.hbm %s3695_s3, 16384 }
 0x3f6   : > { %p2777_p4 = scmp.ne.s32.totalorder %s3642_s22, %s2776_s11  ;;  %p2781_p9 = scmp.lt.u32.totalorder %s3642_s22, %s3695_s3 }
 0x3f7   : > { %p2782_p1 = scmp.lt.u32.totalorder %s2780_s23, %s2776_s11  ;;  %p2784_p6 = scmp.lt.u32.totalorder %s2776_s11, %s3642_s22 }
 0x3f8   : > { %p2778_p5 = pnand %p2777_p4, %p3796_p11 }
 0x3f9   : > { %p2783_p3 = por %p2782_p1, %p2781_p9 }
 0x3fa   : > { %p2779_p7 = pneg %p2778_p5 }
 0x3fb   : > { %p2785_p12 = por %p2784_p6, %p2783_p3 }
 0x3fd   : > { %p2786_p13 = pnand %p2785_p12, %p2779_p7 }
 0x3ff   : > { %2789 = shalt.err (!%p2786_p13)
}
 0x400   : > { %s2837_s7 = smov 256   ;;  %s2838_s8 = smov 16  }
 0x401   : > { %2613 = dma.vmem_to_hbm [thread:$0]  (%p3796_p11), %s3644_s17, 8192, %s3642_s22, %s1987_s16, %s2837_s7, %s2837_s7, %s2838_s8  }
 0x402 PF: > { %s2016_s9 = sand.u32 1, %s2816_s12   ;;  %p3797_p8 = scmp.ne.s32.totalorder %s3728_s25, 0 }
 0x403   : > { %p3798_p10 = scmp.ge.s32.totalorder %s2828_s15, 2  ;;  %s2017_s19 = scalar_lea.sflag [#allocation4], %s2016_s9 }
 0x405   : > { %p2620_p0 = pnand %p3798_p10, %p3797_p8 }
 0x407   : > { %2811 = dma.done.wait (!%p2620_p0), %s2017_s19, 8192  }
 0x408   : > { %2813 = vsyncadd (!%p2620_p0), %s2017_s19, 4294959104  ;;  %p16_p2 = scmp.ge.s32.totalorder %s2884_s18, 4   ;;  %s3799_s12 = smov %s2820_s13 }
 0x409   : > { %s3800_s13 = smov %s2824_s14  ;;  %s3801_s14 = smov %s2896_s21 }
 0x40a   : > { %s3802_s15 = smov %s2884_s18  ;;  %18 = sbr.rel (!%p16_p2) target bundleno = 5 (0x5), region = 77 }
 0x411   :  { %2022 = vsyncpa [#allocation3], 1 }
 0x412   :  { %2024 = vsyncpa [#allocation3 + $0x1], 1 }
 0x413   :  { %2025 = vsyncpa [#allocation4], 1 }
 0x414   :  { %2027 = vsyncpa [#allocation4 + $0x1], 1 }

</bundles_post_ra>
